<compile_context>
chip_gen: v5e
topology: v5e:2x2
jax: 0.10.0
libtpu: 0.0.40
codegen_flags: <defaults>
</compile_context>

<pallas_src>
import functools
import math

import jax
import jax.numpy as jnp
from jax.experimental import pallas as pl
from jax.experimental.pallas import tpu as pltpu


def _embedding_gather_kernel(idx_ref, lut_hbm, o_ref, buf, sems, *, tm, scale):
    """Gather `tm` embedding rows per tile, double-buffered across tiles.

    idx_ref: SMEM (M_padded,) int32      -- scalar-prefetched token ids
    lut_hbm: HBM  (vocab, d_model)       -- full embedding table (no auto-DMA)
    o_ref:   VMEM (tm, d_model)          -- output tile
    buf:     VMEM (2, tm, d_model)       -- double-buffered gather landing pad
    sems:    DMA semaphores (2, tm)      -- one per in-flight row copy
    """
    i = pl.program_id(0)
    n = pl.num_programs(0)
    slot = i & 1

    def fetch(tile_idx, slot_idx):
        base = tile_idx * tm
        for j in range(tm):                 # tm is small & static -> unrolled
            row = idx_ref[base + j]
            pltpu.make_async_copy(
                lut_hbm.at[pl.ds(row, 1), :],
                buf.at[slot_idx, pl.ds(j, 1), :],
                sems.at[slot_idx, j],
            ).start()

    # Prime the pipeline on the first grid step.
    @pl.when(i == 0)
    def _():
        fetch(0, 0)

    # Kick off the next tile's gather before we touch this tile's data, so the
    # DMAs overlap with the scale/cast and the auto-pipelined output writeback.
    @pl.when(i + 1 < n)
    def _():
        fetch(i + 1, 1 - slot)

    # Wait for the current tile's rows (descriptors rebuilt: dst/sem identify
    # the copies; the src slice here is only a shape-carrying dummy).
    for j in range(tm):
        pltpu.make_async_copy(
            lut_hbm.at[pl.ds(0, 1), :],
            buf.at[slot, pl.ds(j, 1), :],
            sems.at[slot, j],
        ).wait()

    # Scale in f32, cast back to the table dtype (matches lut(x) * sqrt(d)).
    o_ref[...] = (buf[slot].astype(jnp.float32) * scale).astype(o_ref.dtype)


def embeddings_forward(token_ids, lut, *, tm=16):
    """token_ids: int array (batch, seq); lut: (vocab, d_model).

    Returns lut[token_ids] * sqrt(d_model), shape (batch, seq, d_model).
    """
    assert tm % 8 == 0, "tm must be a multiple of 8 (sublane tiling)"
    batch, seq = token_ids.shape
    vocab, d_model = lut.shape
    M = batch * seq

    idx_flat = token_ids.reshape(M).astype(jnp.int32)
    num_tiles = -(-M // tm)
    Mp = num_tiles * tm
    if Mp != M:
        # Pad with row index 0 (always valid); padded rows are sliced off below.
        idx_flat = jnp.pad(idx_flat, (0, Mp - M))

    scale = math.sqrt(d_model)
    itemsize = jnp.dtype(lut.dtype).itemsize

    kernel = functools.partial(_embedding_gather_kernel, tm=tm, scale=scale)

    # 2-slot gather buffer + double-buffered output tile + headroom.
    vmem_bytes = int(max(4 * tm * d_model * itemsize + (4 << 20), 16 << 20))

    out = pl.pallas_call(
        kernel,
        out_shape=jax.ShapeDtypeStruct((Mp, d_model), lut.dtype),
        grid_spec=pltpu.PrefetchScalarGridSpec(
            num_scalar_prefetch=1,                         # token ids -> SMEM
            grid=(num_tiles,),
            in_specs=[pl.BlockSpec(memory_space=pl.ANY)],  # lut stays in HBM
            out_specs=pl.BlockSpec((tm, d_model), lambda i, idx: (i, 0)),
            scratch_shapes=[
                pltpu.VMEM((2, tm, d_model), lut.dtype),   # gather double buffer
                pltpu.SemaphoreType.DMA((2, tm)),          # one sem per row DMA
            ],
        ),
        compiler_params=pltpu.CompilerParams(
            # Scratch state (prefetch slot) is carried across grid steps.
            dimension_semantics=("arbitrary",),
            vmem_limit_bytes=vmem_bytes,
        ),
        cost_estimate=pl.CostEstimate(
            flops=Mp * d_model,                            # the scale multiply
            transcendentals=0,
            bytes_accessed=2 * Mp * d_model * itemsize + Mp * 4,
        ),
    )(idx_flat, lut)

    return out[:M].reshape(batch, seq, d_model)


if __name__ == "__main__":
    # Small shapes consistent with the module: x is (batch, seq) token ids.
    batch, seq, d_model, vocab = 2, 16, 128, 512

    key = jax.random.PRNGKey(0)
    k_ids, k_lut = jax.random.split(key)

    token_ids = jax.random.randint(k_ids, (batch, seq), 0, vocab, dtype=jnp.int32)
    lut = jax.random.normal(k_lut, (vocab, d_model), dtype=jnp.float32)

    # 32 tokens with tm=16 -> 2 grid steps, exercising the prefetch pipeline.
    out = embeddings_forward(token_ids, lut, tm=16)
    out = jax.block_until_ready(out)

    # Pure-JAX reference: nn.Embedding lookup then * sqrt(d_model).
    ref = jnp.take(lut, token_ids, axis=0) * math.sqrt(d_model)
    assert out.shape == (batch, seq, d_model)
    assert jnp.allclose(out, ref, atol=1e-5, rtol=1e-5)

    print("KERNEL_OK")
</pallas_src>

<mosaic_0001>
module attributes {stable_mosaic.version = 11 : i64} {
  func.func @_embedding_gather_kernel(%arg0: i32, %arg1: memref<32xi32, #tpu.memory_space<smem>>, %arg2: memref<512x128xf32, #tpu.memory_space<any>>, %arg3: memref<16x128xf32, #tpu.memory_space<vmem>>, %arg4: memref<2x16x128xf32, #tpu.memory_space<vmem>>, %arg5: memref<2x16x!tpu.dma_semaphore, #tpu.memory_space<semaphore_mem>>) attributes {dimension_semantics = [#tpu.dimension_semantics<arbitrary>], iteration_bounds = array<i64: 2>, scalar_prefetch = 1 : i64, scratch_operands = 2 : i64, tpu.core_type = #tpu.core_type<tc>, window_params = [{}, {transform_indices = @transform_1, window_bounds = array<i64: 16, 128>}]} {
    %c1_i32 = arith.constant 1 : i32
    %0 = arith.andi %arg0, %c1_i32 : i32
    %c0_i32 = arith.constant 0 : i32
    %1 = arith.cmpi eq, %arg0, %c0_i32 : i32
    %2 = arith.extui %1 : i1 to i32
    %c0_i32_0 = arith.constant 0 : i32
    %3 = arith.cmpi ne, %2, %c0_i32_0 : i32
    scf.if %3 {
      %c0_73 = arith.constant 0 : index
      %94 = memref.load %arg1[%c0_73] : memref<32xi32, #tpu.memory_space<smem>>
      %c0_i32_74 = arith.constant 0 : i32
      %c0_i32_75 = arith.constant 0 : i32
      %c0_i32_76 = arith.constant 0 : i32
      %c0_i32_77 = arith.constant 0 : i32
      %95 = tpu.memref_slice %arg2[%94, %c0_i32_77] : memref<512x128xf32, #tpu.memory_space<any>> -> memref<1x128xf32, #tpu.memory_space<any>>
      %c0_i32_78 = arith.constant 0 : i32
      %c0_i32_79 = arith.constant 0 : i32
      %96 = tpu.memref_slice %arg4[%c0_i32_74, %c0_i32_78, %c0_i32_79] : memref<2x16x128xf32, #tpu.memory_space<vmem>> -> memref<1x1x128xf32, #tpu.memory_space<vmem>>
      %97 = tpu.memref_squeeze %96 : memref<1x1x128xf32, #tpu.memory_space<vmem>> -> memref<1x128xf32, #tpu.memory_space<vmem>>
      %98 = tpu.memref_slice %arg5[%c0_i32_75, %c0_i32_76] : memref<2x16x!tpu.dma_semaphore, #tpu.memory_space<semaphore_mem>> -> memref<1x1x!tpu.dma_semaphore, #tpu.memory_space<semaphore_mem>>
      %99 = tpu.memref_squeeze %98 : memref<1x1x!tpu.dma_semaphore, #tpu.memory_space<semaphore_mem>> -> memref<!tpu.dma_semaphore, #tpu.memory_space<semaphore_mem>>
      tpu.enqueue_dma source(%95 : memref<1x128xf32, #tpu.memory_space<any>>) target(%97 : memref<1x128xf32, #tpu.memory_space<vmem>>) target_semaphore(%99 : memref<!tpu.dma_semaphore, #tpu.memory_space<semaphore_mem>>)
      %c1 = arith.constant 1 : index
      %100 = memref.load %arg1[%c1] : memref<32xi32, #tpu.memory_space<smem>>
      %c0_i32_80 = arith.constant 0 : i32
      %c0_i32_81 = arith.constant 0 : i32
      %c1_i32_82 = arith.constant 1 : i32
      %c0_i32_83 = arith.constant 0 : i32
      %101 = tpu.memref_slice %arg2[%100, %c0_i32_83] : memref<512x128xf32, #tpu.memory_space<any>> -> memref<1x128xf32, #tpu.memory_space<any>>
      %c1_i32_84 = arith.constant 1 : i32
      %c0_i32_85 = arith.constant 0 : i32
      %102 = tpu.memref_slice %arg4[%c0_i32_80, %c1_i32_84, %c0_i32_85] : memref<2x16x128xf32, #tpu.memory_space<vmem>> -> memref<1x1x128xf32, #tpu.memory_space<vmem>>
      %103 = tpu.memref_squeeze %102 : memref<1x1x128xf32, #tpu.memory_space<vmem>> -> memref<1x128xf32, #tpu.memory_space<vmem>>
      %104 = tpu.memref_slice %arg5[%c0_i32_81, %c1_i32_82] : memref<2x16x!tpu.dma_semaphore, #tpu.memory_space<semaphore_mem>> -> memref<1x1x!tpu.dma_semaphore, #tpu.memory_space<semaphore_mem>>
      %105 = tpu.memref_squeeze %104 : memref<1x1x!tpu.dma_semaphore, #tpu.memory_space<semaphore_mem>> -> memref<!tpu.dma_semaphore, #tpu.memory_space<semaphore_mem>>
      tpu.enqueue_dma source(%101 : memref<1x128xf32, #tpu.memory_space<any>>) target(%103 : memref<1x128xf32, #tpu.memory_space<vmem>>) target_semaphore(%105 : memref<!tpu.dma_semaphore, #tpu.memory_space<semaphore_mem>>)
      %c2 = arith.constant 2 : index
      %106 = memref.load %arg1[%c2] : memref<32xi32, #tpu.memory_space<smem>>
      %c0_i32_86 = arith.constant 0 : i32
      %c0_i32_87 = arith.constant 0 : i32
      %c2_i32_88 = arith.constant 2 : i32
      %c0_i32_89 = arith.constant 0 : i32
      %107 = tpu.memref_slice %arg2[%106, %c0_i32_89] : memref<512x128xf32, #tpu.memory_space<any>> -> memref<1x128xf32, #tpu.memory_space<any>>
      %c2_i32_90 = arith.constant 2 : i32
      %c0_i32_91 = arith.constant 0 : i32
      %108 = tpu.memref_slice %arg4[%c0_i32_86, %c2_i32_90, %c0_i32_91] : memref<2x16x128xf32, #tpu.memory_space<vmem>> -> memref<1x1x128xf32, #tpu.memory_space<vmem>>
      %109 = tpu.memref_squeeze %108 : memref<1x1x128xf32, #tpu.memory_space<vmem>> -> memref<1x128xf32, #tpu.memory_space<vmem>>
      %110 = tpu.memref_slice %arg5[%c0_i32_87, %c2_i32_88] : memref<2x16x!tpu.dma_semaphore, #tpu.memory_space<semaphore_mem>> -> memref<1x1x!tpu.dma_semaphore, #tpu.memory_space<semaphore_mem>>
      %111 = tpu.memref_squeeze %110 : memref<1x1x!tpu.dma_semaphore, #tpu.memory_space<semaphore_mem>> -> memref<!tpu.dma_semaphore, #tpu.memory_space<semaphore_mem>>
      tpu.enqueue_dma source(%107 : memref<1x128xf32, #tpu.memory_space<any>>) target(%109 : memref<1x128xf32, #tpu.memory_space<vmem>>) target_semaphore(%111 : memref<!tpu.dma_semaphore, #tpu.memory_space<semaphore_mem>>)
      %c3 = arith.constant 3 : index
      %112 = memref.load %arg1[%c3] : memref<32xi32, #tpu.memory_space<smem>>
      %c0_i32_92 = arith.constant 0 : i32
      %c0_i32_93 = arith.constant 0 : i32
      %c3_i32_94 = arith.constant 3 : i32
      %c0_i32_95 = arith.constant 0 : i32
      %113 = tpu.memref_slice %arg2[%112, %c0_i32_95] : memref<512x128xf32, #tpu.memory_space<any>> -> memref<1x128xf32, #tpu.memory_space<any>>
      %c3_i32_96 = arith.constant 3 : i32
      %c0_i32_97 = arith.constant 0 : i32
      %114 = tpu.memref_slice %arg4[%c0_i32_92, %c3_i32_96, %c0_i32_97] : memref<2x16x128xf32, #tpu.memory_space<vmem>> -> memref<1x1x128xf32, #tpu.memory_space<vmem>>
      %115 = tpu.memref_squeeze %114 : memref<1x1x128xf32, #tpu.memory_space<vmem>> -> memref<1x128xf32, #tpu.memory_space<vmem>>
      %116 = tpu.memref_slice %arg5[%c0_i32_93, %c3_i32_94] : memref<2x16x!tpu.dma_semaphore, #tpu.memory_space<semaphore_mem>> -> memref<1x1x!tpu.dma_semaphore, #tpu.memory_space<semaphore_mem>>
      %117 = tpu.memref_squeeze %116 : memref<1x1x!tpu.dma_semaphore, #tpu.memory_space<semaphore_mem>> -> memref<!tpu.dma_semaphore, #tpu.memory_space<semaphore_mem>>
      tpu.enqueue_dma source(%113 : memref<1x128xf32, #tpu.memory_space<any>>) target(%115 : memref<1x128xf32, #tpu.memory_space<vmem>>) target_semaphore(%117 : memref<!tpu.dma_semaphore, #tpu.memory_space<semaphore_mem>>)
      %c4 = arith.constant 4 : index
      %118 = memref.load %arg1[%c4] : memref<32xi32, #tpu.memory_space<smem>>
      %c0_i32_98 = arith.constant 0 : i32
      %c0_i32_99 = arith.constant 0 : i32
      %c4_i32_100 = arith.constant 4 : i32
      %c0_i32_101 = arith.constant 0 : i32
      %119 = tpu.memref_slice %arg2[%118, %c0_i32_101] : memref<512x128xf32, #tpu.memory_space<any>> -> memref<1x128xf32, #tpu.memory_space<any>>
      %c4_i32_102 = arith.constant 4 : i32
      %c0_i32_103 = arith.constant 0 : i32
      %120 = tpu.memref_slice %arg4[%c0_i32_98, %c4_i32_102, %c0_i32_103] : memref<2x16x128xf32, #tpu.memory_space<vmem>> -> memref<1x1x128xf32, #tpu.memory_space<vmem>>
      %121 = tpu.memref_squeeze %120 : memref<1x1x128xf32, #tpu.memory_space<vmem>> -> memref<1x128xf32, #tpu.memory_space<vmem>>
      %122 = tpu.memref_slice %arg5[%c0_i32_99, %c4_i32_100] : memref<2x16x!tpu.dma_semaphore, #tpu.memory_space<semaphore_mem>> -> memref<1x1x!tpu.dma_semaphore, #tpu.memory_space<semaphore_mem>>
      %123 = tpu.memref_squeeze %122 : memref<1x1x!tpu.dma_semaphore, #tpu.memory_space<semaphore_mem>> -> memref<!tpu.dma_semaphore, #tpu.memory_space<semaphore_mem>>
      tpu.enqueue_dma source(%119 : memref<1x128xf32, #tpu.memory_space<any>>) target(%121 : memref<1x128xf32, #tpu.memory_space<vmem>>) target_semaphore(%123 : memref<!tpu.dma_semaphore, #tpu.memory_space<semaphore_mem>>)
      %c5 = arith.constant 5 : index
      %124 = memref.load %arg1[%c5] : memref<32xi32, #tpu.memory_space<smem>>
      %c0_i32_104 = arith.constant 0 : i32
      %c0_i32_105 = arith.constant 0 : i32
      %c5_i32_106 = arith.constant 5 : i32
      %c0_i32_107 = arith.constant 0 : i32
      %125 = tpu.memref_slice %arg2[%124, %c0_i32_107] : memref<512x128xf32, #tpu.memory_space<any>> -> memref<1x128xf32, #tpu.memory_space<any>>
      %c5_i32_108 = arith.constant 5 : i32
      %c0_i32_109 = arith.constant 0 : i32
      %126 = tpu.memref_slice %arg4[%c0_i32_104, %c5_i32_108, %c0_i32_109] : memref<2x16x128xf32, #tpu.memory_space<vmem>> -> memref<1x1x128xf32, #tpu.memory_space<vmem>>
      %127 = tpu.memref_squeeze %126 : memref<1x1x128xf32, #tpu.memory_space<vmem>> -> memref<1x128xf32, #tpu.memory_space<vmem>>
      %128 = tpu.memref_slice %arg5[%c0_i32_105, %c5_i32_106] : memref<2x16x!tpu.dma_semaphore, #tpu.memory_space<semaphore_mem>> -> memref<1x1x!tpu.dma_semaphore, #tpu.memory_space<semaphore_mem>>
      %129 = tpu.memref_squeeze %128 : memref<1x1x!tpu.dma_semaphore, #tpu.memory_space<semaphore_mem>> -> memref<!tpu.dma_semaphore, #tpu.memory_space<semaphore_mem>>
      tpu.enqueue_dma source(%125 : memref<1x128xf32, #tpu.memory_space<any>>) target(%127 : memref<1x128xf32, #tpu.memory_space<vmem>>) target_semaphore(%129 : memref<!tpu.dma_semaphore, #tpu.memory_space<semaphore_mem>>)
      %c6 = arith.constant 6 : index
      %130 = memref.load %arg1[%c6] : memref<32xi32, #tpu.memory_space<smem>>
      %c0_i32_110 = arith.constant 0 : i32
      %c0_i32_111 = arith.constant 0 : i32
      %c6_i32_112 = arith.constant 6 : i32
      %c0_i32_113 = arith.constant 0 : i32
      %131 = tpu.memref_slice %arg2[%130, %c0_i32_113] : memref<512x128xf32, #tpu.memory_space<any>> -> memref<1x128xf32, #tpu.memory_space<any>>
      %c6_i32_114 = arith.constant 6 : i32
      %c0_i32_115 = arith.constant 0 : i32
      %132 = tpu.memref_slice %arg4[%c0_i32_110, %c6_i32_114, %c0_i32_115] : memref<2x16x128xf32, #tpu.memory_space<vmem>> -> memref<1x1x128xf32, #tpu.memory_space<vmem>>
      %133 = tpu.memref_squeeze %132 : memref<1x1x128xf32, #tpu.memory_space<vmem>> -> memref<1x128xf32, #tpu.memory_space<vmem>>
      %134 = tpu.memref_slice %arg5[%c0_i32_111, %c6_i32_112] : memref<2x16x!tpu.dma_semaphore, #tpu.memory_space<semaphore_mem>> -> memref<1x1x!tpu.dma_semaphore, #tpu.memory_space<semaphore_mem>>
      %135 = tpu.memref_squeeze %134 : memref<1x1x!tpu.dma_semaphore, #tpu.memory_space<semaphore_mem>> -> memref<!tpu.dma_semaphore, #tpu.memory_space<semaphore_mem>>
      tpu.enqueue_dma source(%131 : memref<1x128xf32, #tpu.memory_space<any>>) target(%133 : memref<1x128xf32, #tpu.memory_space<vmem>>) target_semaphore(%135 : memref<!tpu.dma_semaphore, #tpu.memory_space<semaphore_mem>>)
      %c7 = arith.constant 7 : index
      %136 = memref.load %arg1[%c7] : memref<32xi32, #tpu.memory_space<smem>>
      %c0_i32_116 = arith.constant 0 : i32
      %c0_i32_117 = arith.constant 0 : i32
      %c7_i32_118 = arith.constant 7 : i32
      %c0_i32_119 = arith.constant 0 : i32
      %137 = tpu.memref_slice %arg2[%136, %c0_i32_119] : memref<512x128xf32, #tpu.memory_space<any>> -> memref<1x128xf32, #tpu.memory_space<any>>
      %c7_i32_120 = arith.constant 7 : i32
      %c0_i32_121 = arith.constant 0 : i32
      %138 = tpu.memref_slice %arg4[%c0_i32_116, %c7_i32_120, %c0_i32_121] : memref<2x16x128xf32, #tpu.memory_space<vmem>> -> memref<1x1x128xf32, #tpu.memory_space<vmem>>
      %139 = tpu.memref_squeeze %138 : memref<1x1x128xf32, #tpu.memory_space<vmem>> -> memref<1x128xf32, #tpu.memory_space<vmem>>
      %140 = tpu.memref_slice %arg5[%c0_i32_117, %c7_i32_118] : memref<2x16x!tpu.dma_semaphore, #tpu.memory_space<semaphore_mem>> -> memref<1x1x!tpu.dma_semaphore, #tpu.memory_space<semaphore_mem>>
      %141 = tpu.memref_squeeze %140 : memref<1x1x!tpu.dma_semaphore, #tpu.memory_space<semaphore_mem>> -> memref<!tpu.dma_semaphore, #tpu.memory_space<semaphore_mem>>
      tpu.enqueue_dma source(%137 : memref<1x128xf32, #tpu.memory_space<any>>) target(%139 : memref<1x128xf32, #tpu.memory_space<vmem>>) target_semaphore(%141 : memref<!tpu.dma_semaphore, #tpu.memory_space<semaphore_mem>>)
      %c8 = arith.constant 8 : index
      %142 = memref.load %arg1[%c8] : memref<32xi32, #tpu.memory_space<smem>>
      %c0_i32_122 = arith.constant 0 : i32
      %c0_i32_123 = arith.constant 0 : i32
      %c8_i32_124 = arith.constant 8 : i32
      %c0_i32_125 = arith.constant 0 : i32
      %143 = tpu.memref_slice %arg2[%142, %c0_i32_125] : memref<512x128xf32, #tpu.memory_space<any>> -> memref<1x128xf32, #tpu.memory_space<any>>
      %c8_i32_126 = arith.constant 8 : i32
      %c0_i32_127 = arith.constant 0 : i32
      %144 = tpu.memref_slice %arg4[%c0_i32_122, %c8_i32_126, %c0_i32_127] : memref<2x16x128xf32, #tpu.memory_space<vmem>> -> memref<1x1x128xf32, #tpu.memory_space<vmem>>
      %145 = tpu.memref_squeeze %144 : memref<1x1x128xf32, #tpu.memory_space<vmem>> -> memref<1x128xf32, #tpu.memory_space<vmem>>
      %146 = tpu.memref_slice %arg5[%c0_i32_123, %c8_i32_124] : memref<2x16x!tpu.dma_semaphore, #tpu.memory_space<semaphore_mem>> -> memref<1x1x!tpu.dma_semaphore, #tpu.memory_space<semaphore_mem>>
      %147 = tpu.memref_squeeze %146 : memref<1x1x!tpu.dma_semaphore, #tpu.memory_space<semaphore_mem>> -> memref<!tpu.dma_semaphore, #tpu.memory_space<semaphore_mem>>
      tpu.enqueue_dma source(%143 : memref<1x128xf32, #tpu.memory_space<any>>) target(%145 : memref<1x128xf32, #tpu.memory_space<vmem>>) target_semaphore(%147 : memref<!tpu.dma_semaphore, #tpu.memory_space<semaphore_mem>>)
      %c9 = arith.constant 9 : index
      %148 = memref.load %arg1[%c9] : memref<32xi32, #tpu.memory_space<smem>>
      %c0_i32_128 = arith.constant 0 : i32
      %c0_i32_129 = arith.constant 0 : i32
      %c9_i32_130 = arith.constant 9 : i32
      %c0_i32_131 = arith.constant 0 : i32
      %149 = tpu.memref_slice %arg2[%148, %c0_i32_131] : memref<512x128xf32, #tpu.memory_space<any>> -> memref<1x128xf32, #tpu.memory_space<any>>
      %c9_i32_132 = arith.constant 9 : i32
      %c0_i32_133 = arith.constant 0 : i32
      %150 = tpu.memref_slice %arg4[%c0_i32_128, %c9_i32_132, %c0_i32_133] : memref<2x16x128xf32, #tpu.memory_space<vmem>> -> memref<1x1x128xf32, #tpu.memory_space<vmem>>
      %151 = tpu.memref_squeeze %150 : memref<1x1x128xf32, #tpu.memory_space<vmem>> -> memref<1x128xf32, #tpu.memory_space<vmem>>
      %152 = tpu.memref_slice %arg5[%c0_i32_129, %c9_i32_130] : memref<2x16x!tpu.dma_semaphore, #tpu.memory_space<semaphore_mem>> -> memref<1x1x!tpu.dma_semaphore, #tpu.memory_space<semaphore_mem>>
      %153 = tpu.memref_squeeze %152 : memref<1x1x!tpu.dma_semaphore, #tpu.memory_space<semaphore_mem>> -> memref<!tpu.dma_semaphore, #tpu.memory_space<semaphore_mem>>
      tpu.enqueue_dma source(%149 : memref<1x128xf32, #tpu.memory_space<any>>) target(%151 : memref<1x128xf32, #tpu.memory_space<vmem>>) target_semaphore(%153 : memref<!tpu.dma_semaphore, #tpu.memory_space<semaphore_mem>>)
      %c10 = arith.constant 10 : index
      %154 = memref.load %arg1[%c10] : memref<32xi32, #tpu.memory_space<smem>>
      %c0_i32_134 = arith.constant 0 : i32
      %c0_i32_135 = arith.constant 0 : i32
      %c10_i32_136 = arith.constant 10 : i32
      %c0_i32_137 = arith.constant 0 : i32
      %155 = tpu.memref_slice %arg2[%154, %c0_i32_137] : memref<512x128xf32, #tpu.memory_space<any>> -> memref<1x128xf32, #tpu.memory_space<any>>
      %c10_i32_138 = arith.constant 10 : i32
      %c0_i32_139 = arith.constant 0 : i32
      %156 = tpu.memref_slice %arg4[%c0_i32_134, %c10_i32_138, %c0_i32_139] : memref<2x16x128xf32, #tpu.memory_space<vmem>> -> memref<1x1x128xf32, #tpu.memory_space<vmem>>
      %157 = tpu.memref_squeeze %156 : memref<1x1x128xf32, #tpu.memory_space<vmem>> -> memref<1x128xf32, #tpu.memory_space<vmem>>
      %158 = tpu.memref_slice %arg5[%c0_i32_135, %c10_i32_136] : memref<2x16x!tpu.dma_semaphore, #tpu.memory_space<semaphore_mem>> -> memref<1x1x!tpu.dma_semaphore, #tpu.memory_space<semaphore_mem>>
      %159 = tpu.memref_squeeze %158 : memref<1x1x!tpu.dma_semaphore, #tpu.memory_space<semaphore_mem>> -> memref<!tpu.dma_semaphore, #tpu.memory_space<semaphore_mem>>
      tpu.enqueue_dma source(%155 : memref<1x128xf32, #tpu.memory_space<any>>) target(%157 : memref<1x128xf32, #tpu.memory_space<vmem>>) target_semaphore(%159 : memref<!tpu.dma_semaphore, #tpu.memory_space<semaphore_mem>>)
      %c11 = arith.constant 11 : index
      %160 = memref.load %arg1[%c11] : memref<32xi32, #tpu.memory_space<smem>>
      %c0_i32_140 = arith.constant 0 : i32
      %c0_i32_141 = arith.constant 0 : i32
      %c11_i32_142 = arith.constant 11 : i32
      %c0_i32_143 = arith.constant 0 : i32
      %161 = tpu.memref_slice %arg2[%160, %c0_i32_143] : memref<512x128xf32, #tpu.memory_space<any>> -> memref<1x128xf32, #tpu.memory_space<any>>
      %c11_i32_144 = arith.constant 11 : i32
      %c0_i32_145 = arith.constant 0 : i32
      %162 = tpu.memref_slice %arg4[%c0_i32_140, %c11_i32_144, %c0_i32_145] : memref<2x16x128xf32, #tpu.memory_space<vmem>> -> memref<1x1x128xf32, #tpu.memory_space<vmem>>
      %163 = tpu.memref_squeeze %162 : memref<1x1x128xf32, #tpu.memory_space<vmem>> -> memref<1x128xf32, #tpu.memory_space<vmem>>
      %164 = tpu.memref_slice %arg5[%c0_i32_141, %c11_i32_142] : memref<2x16x!tpu.dma_semaphore, #tpu.memory_space<semaphore_mem>> -> memref<1x1x!tpu.dma_semaphore, #tpu.memory_space<semaphore_mem>>
      %165 = tpu.memref_squeeze %164 : memref<1x1x!tpu.dma_semaphore, #tpu.memory_space<semaphore_mem>> -> memref<!tpu.dma_semaphore, #tpu.memory_space<semaphore_mem>>
      tpu.enqueue_dma source(%161 : memref<1x128xf32, #tpu.memory_space<any>>) target(%163 : memref<1x128xf32, #tpu.memory_space<vmem>>) target_semaphore(%165 : memref<!tpu.dma_semaphore, #tpu.memory_space<semaphore_mem>>)
      %c12 = arith.constant 12 : index
      %166 = memref.load %arg1[%c12] : memref<32xi32, #tpu.memory_space<smem>>
      %c0_i32_146 = arith.constant 0 : i32
      %c0_i32_147 = arith.constant 0 : i32
      %c12_i32_148 = arith.constant 12 : i32
      %c0_i32_149 = arith.constant 0 : i32
      %167 = tpu.memref_slice %arg2[%166, %c0_i32_149] : memref<512x128xf32, #tpu.memory_space<any>> -> memref<1x128xf32, #tpu.memory_space<any>>
      %c12_i32_150 = arith.constant 12 : i32
      %c0_i32_151 = arith.constant 0 : i32
      %168 = tpu.memref_slice %arg4[%c0_i32_146, %c12_i32_150, %c0_i32_151] : memref<2x16x128xf32, #tpu.memory_space<vmem>> -> memref<1x1x128xf32, #tpu.memory_space<vmem>>
      %169 = tpu.memref_squeeze %168 : memref<1x1x128xf32, #tpu.memory_space<vmem>> -> memref<1x128xf32, #tpu.memory_space<vmem>>
      %170 = tpu.memref_slice %arg5[%c0_i32_147, %c12_i32_148] : memref<2x16x!tpu.dma_semaphore, #tpu.memory_space<semaphore_mem>> -> memref<1x1x!tpu.dma_semaphore, #tpu.memory_space<semaphore_mem>>
      %171 = tpu.memref_squeeze %170 : memref<1x1x!tpu.dma_semaphore, #tpu.memory_space<semaphore_mem>> -> memref<!tpu.dma_semaphore, #tpu.memory_space<semaphore_mem>>
      tpu.enqueue_dma source(%167 : memref<1x128xf32, #tpu.memory_space<any>>) target(%169 : memref<1x128xf32, #tpu.memory_space<vmem>>) target_semaphore(%171 : memref<!tpu.dma_semaphore, #tpu.memory_space<semaphore_mem>>)
      %c13 = arith.constant 13 : index
      %172 = memref.load %arg1[%c13] : memref<32xi32, #tpu.memory_space<smem>>
      %c0_i32_152 = arith.constant 0 : i32
      %c0_i32_153 = arith.constant 0 : i32
      %c13_i32_154 = arith.constant 13 : i32
      %c0_i32_155 = arith.constant 0 : i32
      %173 = tpu.memref_slice %arg2[%172, %c0_i32_155] : memref<512x128xf32, #tpu.memory_space<any>> -> memref<1x128xf32, #tpu.memory_space<any>>
      %c13_i32_156 = arith.constant 13 : i32
      %c0_i32_157 = arith.constant 0 : i32
      %174 = tpu.memref_slice %arg4[%c0_i32_152, %c13_i32_156, %c0_i32_157] : memref<2x16x128xf32, #tpu.memory_space<vmem>> -> memref<1x1x128xf32, #tpu.memory_space<vmem>>
      %175 = tpu.memref_squeeze %174 : memref<1x1x128xf32, #tpu.memory_space<vmem>> -> memref<1x128xf32, #tpu.memory_space<vmem>>
      %176 = tpu.memref_slice %arg5[%c0_i32_153, %c13_i32_154] : memref<2x16x!tpu.dma_semaphore, #tpu.memory_space<semaphore_mem>> -> memref<1x1x!tpu.dma_semaphore, #tpu.memory_space<semaphore_mem>>
      %177 = tpu.memref_squeeze %176 : memref<1x1x!tpu.dma_semaphore, #tpu.memory_space<semaphore_mem>> -> memref<!tpu.dma_semaphore, #tpu.memory_space<semaphore_mem>>
      tpu.enqueue_dma source(%173 : memref<1x128xf32, #tpu.memory_space<any>>) target(%175 : memref<1x128xf32, #tpu.memory_space<vmem>>) target_semaphore(%177 : memref<!tpu.dma_semaphore, #tpu.memory_space<semaphore_mem>>)
      %c14 = arith.constant 14 : index
      %178 = memref.load %arg1[%c14] : memref<32xi32, #tpu.memory_space<smem>>
      %c0_i32_158 = arith.constant 0 : i32
      %c0_i32_159 = arith.constant 0 : i32
      %c14_i32_160 = arith.constant 14 : i32
      %c0_i32_161 = arith.constant 0 : i32
      %179 = tpu.memref_slice %arg2[%178, %c0_i32_161] : memref<512x128xf32, #tpu.memory_space<any>> -> memref<1x128xf32, #tpu.memory_space<any>>
      %c14_i32_162 = arith.constant 14 : i32
      %c0_i32_163 = arith.constant 0 : i32
      %180 = tpu.memref_slice %arg4[%c0_i32_158, %c14_i32_162, %c0_i32_163] : memref<2x16x128xf32, #tpu.memory_space<vmem>> -> memref<1x1x128xf32, #tpu.memory_space<vmem>>
      %181 = tpu.memref_squeeze %180 : memref<1x1x128xf32, #tpu.memory_space<vmem>> -> memref<1x128xf32, #tpu.memory_space<vmem>>
      %182 = tpu.memref_slice %arg5[%c0_i32_159, %c14_i32_160] : memref<2x16x!tpu.dma_semaphore, #tpu.memory_space<semaphore_mem>> -> memref<1x1x!tpu.dma_semaphore, #tpu.memory_space<semaphore_mem>>
      %183 = tpu.memref_squeeze %182 : memref<1x1x!tpu.dma_semaphore, #tpu.memory_space<semaphore_mem>> -> memref<!tpu.dma_semaphore, #tpu.memory_space<semaphore_mem>>
      tpu.enqueue_dma source(%179 : memref<1x128xf32, #tpu.memory_space<any>>) target(%181 : memref<1x128xf32, #tpu.memory_space<vmem>>) target_semaphore(%183 : memref<!tpu.dma_semaphore, #tpu.memory_space<semaphore_mem>>)
      %c15 = arith.constant 15 : index
      %184 = memref.load %arg1[%c15] : memref<32xi32, #tpu.memory_space<smem>>
      %c0_i32_164 = arith.constant 0 : i32
      %c0_i32_165 = arith.constant 0 : i32
      %c15_i32_166 = arith.constant 15 : i32
      %c0_i32_167 = arith.constant 0 : i32
      %185 = tpu.memref_slice %arg2[%184, %c0_i32_167] : memref<512x128xf32, #tpu.memory_space<any>> -> memref<1x128xf32, #tpu.memory_space<any>>
      %c15_i32_168 = arith.constant 15 : i32
      %c0_i32_169 = arith.constant 0 : i32
      %186 = tpu.memref_slice %arg4[%c0_i32_164, %c15_i32_168, %c0_i32_169] : memref<2x16x128xf32, #tpu.memory_space<vmem>> -> memref<1x1x128xf32, #tpu.memory_space<vmem>>
      %187 = tpu.memref_squeeze %186 : memref<1x1x128xf32, #tpu.memory_space<vmem>> -> memref<1x128xf32, #tpu.memory_space<vmem>>
      %188 = tpu.memref_slice %arg5[%c0_i32_165, %c15_i32_166] : memref<2x16x!tpu.dma_semaphore, #tpu.memory_space<semaphore_mem>> -> memref<1x1x!tpu.dma_semaphore, #tpu.memory_space<semaphore_mem>>
      %189 = tpu.memref_squeeze %188 : memref<1x1x!tpu.dma_semaphore, #tpu.memory_space<semaphore_mem>> -> memref<!tpu.dma_semaphore, #tpu.memory_space<semaphore_mem>>
      tpu.enqueue_dma source(%185 : memref<1x128xf32, #tpu.memory_space<any>>) target(%187 : memref<1x128xf32, #tpu.memory_space<vmem>>) target_semaphore(%189 : memref<!tpu.dma_semaphore, #tpu.memory_space<semaphore_mem>>)
    } else {
    }
    %c1_i32_1 = arith.constant 1 : i32
    %4 = arith.addi %arg0, %c1_i32_1 : i32
    %c2_i32 = arith.constant 2 : i32
    %5 = arith.cmpi slt, %4, %c2_i32 : i32
    %6 = arith.extui %5 : i1 to i32
    %c0_i32_2 = arith.constant 0 : i32
    %7 = arith.cmpi ne, %6, %c0_i32_2 : i32
    scf.if %7 {
      %c1_i32_73 = arith.constant 1 : i32
      %94 = arith.addi %arg0, %c1_i32_73 : i32
      %c1_i32_74 = arith.constant 1 : i32
      %95 = arith.subi %c1_i32_74, %0 : i32
      %c16_i32 = arith.constant 16 : i32
      %96 = arith.muli %94, %c16_i32 : i32
      %c0_i32_75 = arith.constant 0 : i32
      %97 = arith.addi %96, %c0_i32_75 : i32
      %98 = arith.index_cast %97 : i32 to index
      %99 = memref.load %arg1[%98] : memref<32xi32, #tpu.memory_space<smem>>
      %c0_i32_76 = arith.constant 0 : i32
      %c0_i32_77 = arith.constant 0 : i32
      %100 = tpu.memref_slice %arg2[%99, %c0_i32_77] : memref<512x128xf32, #tpu.memory_space<any>> -> memref<1x128xf32, #tpu.memory_space<any>>
      %c0_i32_78 = arith.constant 0 : i32
      %c0_i32_79 = arith.constant 0 : i32
      %101 = tpu.memref_slice %arg4[%95, %c0_i32_78, %c0_i32_79] : memref<2x16x128xf32, #tpu.memory_space<vmem>> -> memref<1x1x128xf32, #tpu.memory_space<vmem>>
      %102 = tpu.memref_squeeze %101 : memref<1x1x128xf32, #tpu.memory_space<vmem>> -> memref<1x128xf32, #tpu.memory_space<vmem>>
      %103 = tpu.memref_slice %arg5[%95, %c0_i32_76] : memref<2x16x!tpu.dma_semaphore, #tpu.memory_space<semaphore_mem>> -> memref<1x1x!tpu.dma_semaphore, #tpu.memory_space<semaphore_mem>>
      %104 = tpu.memref_squeeze %103 : memref<1x1x!tpu.dma_semaphore, #tpu.memory_space<semaphore_mem>> -> memref<!tpu.dma_semaphore, #tpu.memory_space<semaphore_mem>>
      tpu.enqueue_dma source(%100 : memref<1x128xf32, #tpu.memory_space<any>>) target(%102 : memref<1x128xf32, #tpu.memory_space<vmem>>) target_semaphore(%104 : memref<!tpu.dma_semaphore, #tpu.memory_space<semaphore_mem>>)
      %c1_i32_80 = arith.constant 1 : i32
      %105 = arith.addi %96, %c1_i32_80 : i32
      %106 = arith.index_cast %105 : i32 to index
      %107 = memref.load %arg1[%106] : memref<32xi32, #tpu.memory_space<smem>>
      %c1_i32_81 = arith.constant 1 : i32
      %c0_i32_82 = arith.constant 0 : i32
      %108 = tpu.memref_slice %arg2[%107, %c0_i32_82] : memref<512x128xf32, #tpu.memory_space<any>> -> memref<1x128xf32, #tpu.memory_space<any>>
      %c1_i32_83 = arith.constant 1 : i32
      %c0_i32_84 = arith.constant 0 : i32
      %109 = tpu.memref_slice %arg4[%95, %c1_i32_83, %c0_i32_84] : memref<2x16x128xf32, #tpu.memory_space<vmem>> -> memref<1x1x128xf32, #tpu.memory_space<vmem>>
      %110 = tpu.memref_squeeze %109 : memref<1x1x128xf32, #tpu.memory_space<vmem>> -> memref<1x128xf32, #tpu.memory_space<vmem>>
      %111 = tpu.memref_slice %arg5[%95, %c1_i32_81] : memref<2x16x!tpu.dma_semaphore, #tpu.memory_space<semaphore_mem>> -> memref<1x1x!tpu.dma_semaphore, #tpu.memory_space<semaphore_mem>>
      %112 = tpu.memref_squeeze %111 : memref<1x1x!tpu.dma_semaphore, #tpu.memory_space<semaphore_mem>> -> memref<!tpu.dma_semaphore, #tpu.memory_space<semaphore_mem>>
      tpu.enqueue_dma source(%108 : memref<1x128xf32, #tpu.memory_space<any>>) target(%110 : memref<1x128xf32, #tpu.memory_space<vmem>>) target_semaphore(%112 : memref<!tpu.dma_semaphore, #tpu.memory_space<semaphore_mem>>)
      %c2_i32_85 = arith.constant 2 : i32
      %113 = arith.addi %96, %c2_i32_85 : i32
      %114 = arith.index_cast %113 : i32 to index
      %115 = memref.load %arg1[%114] : memref<32xi32, #tpu.memory_space<smem>>
      %c2_i32_86 = arith.constant 2 : i32
      %c0_i32_87 = arith.constant 0 : i32
      %116 = tpu.memref_slice %arg2[%115, %c0_i32_87] : memref<512x128xf32, #tpu.memory_space<any>> -> memref<1x128xf32, #tpu.memory_space<any>>
      %c2_i32_88 = arith.constant 2 : i32
      %c0_i32_89 = arith.constant 0 : i32
      %117 = tpu.memref_slice %arg4[%95, %c2_i32_88, %c0_i32_89] : memref<2x16x128xf32, #tpu.memory_space<vmem>> -> memref<1x1x128xf32, #tpu.memory_space<vmem>>
      %118 = tpu.memref_squeeze %117 : memref<1x1x128xf32, #tpu.memory_space<vmem>> -> memref<1x128xf32, #tpu.memory_space<vmem>>
      %119 = tpu.memref_slice %arg5[%95, %c2_i32_86] : memref<2x16x!tpu.dma_semaphore, #tpu.memory_space<semaphore_mem>> -> memref<1x1x!tpu.dma_semaphore, #tpu.memory_space<semaphore_mem>>
      %120 = tpu.memref_squeeze %119 : memref<1x1x!tpu.dma_semaphore, #tpu.memory_space<semaphore_mem>> -> memref<!tpu.dma_semaphore, #tpu.memory_space<semaphore_mem>>
      tpu.enqueue_dma source(%116 : memref<1x128xf32, #tpu.memory_space<any>>) target(%118 : memref<1x128xf32, #tpu.memory_space<vmem>>) target_semaphore(%120 : memref<!tpu.dma_semaphore, #tpu.memory_space<semaphore_mem>>)
      %c3_i32_90 = arith.constant 3 : i32
      %121 = arith.addi %96, %c3_i32_90 : i32
      %122 = arith.index_cast %121 : i32 to index
      %123 = memref.load %arg1[%122] : memref<32xi32, #tpu.memory_space<smem>>
      %c3_i32_91 = arith.constant 3 : i32
      %c0_i32_92 = arith.constant 0 : i32
      %124 = tpu.memref_slice %arg2[%123, %c0_i32_92] : memref<512x128xf32, #tpu.memory_space<any>> -> memref<1x128xf32, #tpu.memory_space<any>>
      %c3_i32_93 = arith.constant 3 : i32
      %c0_i32_94 = arith.constant 0 : i32
      %125 = tpu.memref_slice %arg4[%95, %c3_i32_93, %c0_i32_94] : memref<2x16x128xf32, #tpu.memory_space<vmem>> -> memref<1x1x128xf32, #tpu.memory_space<vmem>>
      %126 = tpu.memref_squeeze %125 : memref<1x1x128xf32, #tpu.memory_space<vmem>> -> memref<1x128xf32, #tpu.memory_space<vmem>>
      %127 = tpu.memref_slice %arg5[%95, %c3_i32_91] : memref<2x16x!tpu.dma_semaphore, #tpu.memory_space<semaphore_mem>> -> memref<1x1x!tpu.dma_semaphore, #tpu.memory_space<semaphore_mem>>
      %128 = tpu.memref_squeeze %127 : memref<1x1x!tpu.dma_semaphore, #tpu.memory_space<semaphore_mem>> -> memref<!tpu.dma_semaphore, #tpu.memory_space<semaphore_mem>>
      tpu.enqueue_dma source(%124 : memref<1x128xf32, #tpu.memory_space<any>>) target(%126 : memref<1x128xf32, #tpu.memory_space<vmem>>) target_semaphore(%128 : memref<!tpu.dma_semaphore, #tpu.memory_space<semaphore_mem>>)
      %c4_i32_95 = arith.constant 4 : i32
      %129 = arith.addi %96, %c4_i32_95 : i32
      %130 = arith.index_cast %129 : i32 to index
      %131 = memref.load %arg1[%130] : memref<32xi32, #tpu.memory_space<smem>>
      %c4_i32_96 = arith.constant 4 : i32
      %c0_i32_97 = arith.constant 0 : i32
      %132 = tpu.memref_slice %arg2[%131, %c0_i32_97] : memref<512x128xf32, #tpu.memory_space<any>> -> memref<1x128xf32, #tpu.memory_space<any>>
      %c4_i32_98 = arith.constant 4 : i32
      %c0_i32_99 = arith.constant 0 : i32
      %133 = tpu.memref_slice %arg4[%95, %c4_i32_98, %c0_i32_99] : memref<2x16x128xf32, #tpu.memory_space<vmem>> -> memref<1x1x128xf32, #tpu.memory_space<vmem>>
      %134 = tpu.memref_squeeze %133 : memref<1x1x128xf32, #tpu.memory_space<vmem>> -> memref<1x128xf32, #tpu.memory_space<vmem>>
      %135 = tpu.memref_slice %arg5[%95, %c4_i32_96] : memref<2x16x!tpu.dma_semaphore, #tpu.memory_space<semaphore_mem>> -> memref<1x1x!tpu.dma_semaphore, #tpu.memory_space<semaphore_mem>>
      %136 = tpu.memref_squeeze %135 : memref<1x1x!tpu.dma_semaphore, #tpu.memory_space<semaphore_mem>> -> memref<!tpu.dma_semaphore, #tpu.memory_space<semaphore_mem>>
      tpu.enqueue_dma source(%132 : memref<1x128xf32, #tpu.memory_space<any>>) target(%134 : memref<1x128xf32, #tpu.memory_space<vmem>>) target_semaphore(%136 : memref<!tpu.dma_semaphore, #tpu.memory_space<semaphore_mem>>)
      %c5_i32_100 = arith.constant 5 : i32
      %137 = arith.addi %96, %c5_i32_100 : i32
      %138 = arith.index_cast %137 : i32 to index
      %139 = memref.load %arg1[%138] : memref<32xi32, #tpu.memory_space<smem>>
      %c5_i32_101 = arith.constant 5 : i32
      %c0_i32_102 = arith.constant 0 : i32
      %140 = tpu.memref_slice %arg2[%139, %c0_i32_102] : memref<512x128xf32, #tpu.memory_space<any>> -> memref<1x128xf32, #tpu.memory_space<any>>
      %c5_i32_103 = arith.constant 5 : i32
      %c0_i32_104 = arith.constant 0 : i32
      %141 = tpu.memref_slice %arg4[%95, %c5_i32_103, %c0_i32_104] : memref<2x16x128xf32, #tpu.memory_space<vmem>> -> memref<1x1x128xf32, #tpu.memory_space<vmem>>
      %142 = tpu.memref_squeeze %141 : memref<1x1x128xf32, #tpu.memory_space<vmem>> -> memref<1x128xf32, #tpu.memory_space<vmem>>
      %143 = tpu.memref_slice %arg5[%95, %c5_i32_101] : memref<2x16x!tpu.dma_semaphore, #tpu.memory_space<semaphore_mem>> -> memref<1x1x!tpu.dma_semaphore, #tpu.memory_space<semaphore_mem>>
      %144 = tpu.memref_squeeze %143 : memref<1x1x!tpu.dma_semaphore, #tpu.memory_space<semaphore_mem>> -> memref<!tpu.dma_semaphore, #tpu.memory_space<semaphore_mem>>
      tpu.enqueue_dma source(%140 : memref<1x128xf32, #tpu.memory_space<any>>) target(%142 : memref<1x128xf32, #tpu.memory_space<vmem>>) target_semaphore(%144 : memref<!tpu.dma_semaphore, #tpu.memory_space<semaphore_mem>>)
      %c6_i32_105 = arith.constant 6 : i32
      %145 = arith.addi %96, %c6_i32_105 : i32
      %146 = arith.index_cast %145 : i32 to index
      %147 = memref.load %arg1[%146] : memref<32xi32, #tpu.memory_space<smem>>
      %c6_i32_106 = arith.constant 6 : i32
      %c0_i32_107 = arith.constant 0 : i32
      %148 = tpu.memref_slice %arg2[%147, %c0_i32_107] : memref<512x128xf32, #tpu.memory_space<any>> -> memref<1x128xf32, #tpu.memory_space<any>>
      %c6_i32_108 = arith.constant 6 : i32
      %c0_i32_109 = arith.constant 0 : i32
      %149 = tpu.memref_slice %arg4[%95, %c6_i32_108, %c0_i32_109] : memref<2x16x128xf32, #tpu.memory_space<vmem>> -> memref<1x1x128xf32, #tpu.memory_space<vmem>>
      %150 = tpu.memref_squeeze %149 : memref<1x1x128xf32, #tpu.memory_space<vmem>> -> memref<1x128xf32, #tpu.memory_space<vmem>>
      %151 = tpu.memref_slice %arg5[%95, %c6_i32_106] : memref<2x16x!tpu.dma_semaphore, #tpu.memory_space<semaphore_mem>> -> memref<1x1x!tpu.dma_semaphore, #tpu.memory_space<semaphore_mem>>
      %152 = tpu.memref_squeeze %151 : memref<1x1x!tpu.dma_semaphore, #tpu.memory_space<semaphore_mem>> -> memref<!tpu.dma_semaphore, #tpu.memory_space<semaphore_mem>>
      tpu.enqueue_dma source(%148 : memref<1x128xf32, #tpu.memory_space<any>>) target(%150 : memref<1x128xf32, #tpu.memory_space<vmem>>) target_semaphore(%152 : memref<!tpu.dma_semaphore, #tpu.memory_space<semaphore_mem>>)
      %c7_i32_110 = arith.constant 7 : i32
      %153 = arith.addi %96, %c7_i32_110 : i32
      %154 = arith.index_cast %153 : i32 to index
      %155 = memref.load %arg1[%154] : memref<32xi32, #tpu.memory_space<smem>>
      %c7_i32_111 = arith.constant 7 : i32
      %c0_i32_112 = arith.constant 0 : i32
      %156 = tpu.memref_slice %arg2[%155, %c0_i32_112] : memref<512x128xf32, #tpu.memory_space<any>> -> memref<1x128xf32, #tpu.memory_space<any>>
      %c7_i32_113 = arith.constant 7 : i32
      %c0_i32_114 = arith.constant 0 : i32
      %157 = tpu.memref_slice %arg4[%95, %c7_i32_113, %c0_i32_114] : memref<2x16x128xf32, #tpu.memory_space<vmem>> -> memref<1x1x128xf32, #tpu.memory_space<vmem>>
      %158 = tpu.memref_squeeze %157 : memref<1x1x128xf32, #tpu.memory_space<vmem>> -> memref<1x128xf32, #tpu.memory_space<vmem>>
      %159 = tpu.memref_slice %arg5[%95, %c7_i32_111] : memref<2x16x!tpu.dma_semaphore, #tpu.memory_space<semaphore_mem>> -> memref<1x1x!tpu.dma_semaphore, #tpu.memory_space<semaphore_mem>>
      %160 = tpu.memref_squeeze %159 : memref<1x1x!tpu.dma_semaphore, #tpu.memory_space<semaphore_mem>> -> memref<!tpu.dma_semaphore, #tpu.memory_space<semaphore_mem>>
      tpu.enqueue_dma source(%156 : memref<1x128xf32, #tpu.memory_space<any>>) target(%158 : memref<1x128xf32, #tpu.memory_space<vmem>>) target_semaphore(%160 : memref<!tpu.dma_semaphore, #tpu.memory_space<semaphore_mem>>)
      %c8_i32_115 = arith.constant 8 : i32
      %161 = arith.addi %96, %c8_i32_115 : i32
      %162 = arith.index_cast %161 : i32 to index
      %163 = memref.load %arg1[%162] : memref<32xi32, #tpu.memory_space<smem>>
      %c8_i32_116 = arith.constant 8 : i32
      %c0_i32_117 = arith.constant 0 : i32
      %164 = tpu.memref_slice %arg2[%163, %c0_i32_117] : memref<512x128xf32, #tpu.memory_space<any>> -> memref<1x128xf32, #tpu.memory_space<any>>
      %c8_i32_118 = arith.constant 8 : i32
      %c0_i32_119 = arith.constant 0 : i32
      %165 = tpu.memref_slice %arg4[%95, %c8_i32_118, %c0_i32_119] : memref<2x16x128xf32, #tpu.memory_space<vmem>> -> memref<1x1x128xf32, #tpu.memory_space<vmem>>
      %166 = tpu.memref_squeeze %165 : memref<1x1x128xf32, #tpu.memory_space<vmem>> -> memref<1x128xf32, #tpu.memory_space<vmem>>
      %167 = tpu.memref_slice %arg5[%95, %c8_i32_116] : memref<2x16x!tpu.dma_semaphore, #tpu.memory_space<semaphore_mem>> -> memref<1x1x!tpu.dma_semaphore, #tpu.memory_space<semaphore_mem>>
      %168 = tpu.memref_squeeze %167 : memref<1x1x!tpu.dma_semaphore, #tpu.memory_space<semaphore_mem>> -> memref<!tpu.dma_semaphore, #tpu.memory_space<semaphore_mem>>
      tpu.enqueue_dma source(%164 : memref<1x128xf32, #tpu.memory_space<any>>) target(%166 : memref<1x128xf32, #tpu.memory_space<vmem>>) target_semaphore(%168 : memref<!tpu.dma_semaphore, #tpu.memory_space<semaphore_mem>>)
      %c9_i32_120 = arith.constant 9 : i32
      %169 = arith.addi %96, %c9_i32_120 : i32
      %170 = arith.index_cast %169 : i32 to index
      %171 = memref.load %arg1[%170] : memref<32xi32, #tpu.memory_space<smem>>
      %c9_i32_121 = arith.constant 9 : i32
      %c0_i32_122 = arith.constant 0 : i32
      %172 = tpu.memref_slice %arg2[%171, %c0_i32_122] : memref<512x128xf32, #tpu.memory_space<any>> -> memref<1x128xf32, #tpu.memory_space<any>>
      %c9_i32_123 = arith.constant 9 : i32
      %c0_i32_124 = arith.constant 0 : i32
      %173 = tpu.memref_slice %arg4[%95, %c9_i32_123, %c0_i32_124] : memref<2x16x128xf32, #tpu.memory_space<vmem>> -> memref<1x1x128xf32, #tpu.memory_space<vmem>>
      %174 = tpu.memref_squeeze %173 : memref<1x1x128xf32, #tpu.memory_space<vmem>> -> memref<1x128xf32, #tpu.memory_space<vmem>>
      %175 = tpu.memref_slice %arg5[%95, %c9_i32_121] : memref<2x16x!tpu.dma_semaphore, #tpu.memory_space<semaphore_mem>> -> memref<1x1x!tpu.dma_semaphore, #tpu.memory_space<semaphore_mem>>
      %176 = tpu.memref_squeeze %175 : memref<1x1x!tpu.dma_semaphore, #tpu.memory_space<semaphore_mem>> -> memref<!tpu.dma_semaphore, #tpu.memory_space<semaphore_mem>>
      tpu.enqueue_dma source(%172 : memref<1x128xf32, #tpu.memory_space<any>>) target(%174 : memref<1x128xf32, #tpu.memory_space<vmem>>) target_semaphore(%176 : memref<!tpu.dma_semaphore, #tpu.memory_space<semaphore_mem>>)
      %c10_i32_125 = arith.constant 10 : i32
      %177 = arith.addi %96, %c10_i32_125 : i32
      %178 = arith.index_cast %177 : i32 to index
      %179 = memref.load %arg1[%178] : memref<32xi32, #tpu.memory_space<smem>>
      %c10_i32_126 = arith.constant 10 : i32
      %c0_i32_127 = arith.constant 0 : i32
      %180 = tpu.memref_slice %arg2[%179, %c0_i32_127] : memref<512x128xf32, #tpu.memory_space<any>> -> memref<1x128xf32, #tpu.memory_space<any>>
      %c10_i32_128 = arith.constant 10 : i32
      %c0_i32_129 = arith.constant 0 : i32
      %181 = tpu.memref_slice %arg4[%95, %c10_i32_128, %c0_i32_129] : memref<2x16x128xf32, #tpu.memory_space<vmem>> -> memref<1x1x128xf32, #tpu.memory_space<vmem>>
      %182 = tpu.memref_squeeze %181 : memref<1x1x128xf32, #tpu.memory_space<vmem>> -> memref<1x128xf32, #tpu.memory_space<vmem>>
      %183 = tpu.memref_slice %arg5[%95, %c10_i32_126] : memref<2x16x!tpu.dma_semaphore, #tpu.memory_space<semaphore_mem>> -> memref<1x1x!tpu.dma_semaphore, #tpu.memory_space<semaphore_mem>>
      %184 = tpu.memref_squeeze %183 : memref<1x1x!tpu.dma_semaphore, #tpu.memory_space<semaphore_mem>> -> memref<!tpu.dma_semaphore, #tpu.memory_space<semaphore_mem>>
      tpu.enqueue_dma source(%180 : memref<1x128xf32, #tpu.memory_space<any>>) target(%182 : memref<1x128xf32, #tpu.memory_space<vmem>>) target_semaphore(%184 : memref<!tpu.dma_semaphore, #tpu.memory_space<semaphore_mem>>)
      %c11_i32_130 = arith.constant 11 : i32
      %185 = arith.addi %96, %c11_i32_130 : i32
      %186 = arith.index_cast %185 : i32 to index
      %187 = memref.load %arg1[%186] : memref<32xi32, #tpu.memory_space<smem>>
      %c11_i32_131 = arith.constant 11 : i32
      %c0_i32_132 = arith.constant 0 : i32
      %188 = tpu.memref_slice %arg2[%187, %c0_i32_132] : memref<512x128xf32, #tpu.memory_space<any>> -> memref<1x128xf32, #tpu.memory_space<any>>
      %c11_i32_133 = arith.constant 11 : i32
      %c0_i32_134 = arith.constant 0 : i32
      %189 = tpu.memref_slice %arg4[%95, %c11_i32_133, %c0_i32_134] : memref<2x16x128xf32, #tpu.memory_space<vmem>> -> memref<1x1x128xf32, #tpu.memory_space<vmem>>
      %190 = tpu.memref_squeeze %189 : memref<1x1x128xf32, #tpu.memory_space<vmem>> -> memref<1x128xf32, #tpu.memory_space<vmem>>
      %191 = tpu.memref_slice %arg5[%95, %c11_i32_131] : memref<2x16x!tpu.dma_semaphore, #tpu.memory_space<semaphore_mem>> -> memref<1x1x!tpu.dma_semaphore, #tpu.memory_space<semaphore_mem>>
      %192 = tpu.memref_squeeze %191 : memref<1x1x!tpu.dma_semaphore, #tpu.memory_space<semaphore_mem>> -> memref<!tpu.dma_semaphore, #tpu.memory_space<semaphore_mem>>
      tpu.enqueue_dma source(%188 : memref<1x128xf32, #tpu.memory_space<any>>) target(%190 : memref<1x128xf32, #tpu.memory_space<vmem>>) target_semaphore(%192 : memref<!tpu.dma_semaphore, #tpu.memory_space<semaphore_mem>>)
      %c12_i32_135 = arith.constant 12 : i32
      %193 = arith.addi %96, %c12_i32_135 : i32
      %194 = arith.index_cast %193 : i32 to index
      %195 = memref.load %arg1[%194] : memref<32xi32, #tpu.memory_space<smem>>
      %c12_i32_136 = arith.constant 12 : i32
      %c0_i32_137 = arith.constant 0 : i32
      %196 = tpu.memref_slice %arg2[%195, %c0_i32_137] : memref<512x128xf32, #tpu.memory_space<any>> -> memref<1x128xf32, #tpu.memory_space<any>>
      %c12_i32_138 = arith.constant 12 : i32
      %c0_i32_139 = arith.constant 0 : i32
      %197 = tpu.memref_slice %arg4[%95, %c12_i32_138, %c0_i32_139] : memref<2x16x128xf32, #tpu.memory_space<vmem>> -> memref<1x1x128xf32, #tpu.memory_space<vmem>>
      %198 = tpu.memref_squeeze %197 : memref<1x1x128xf32, #tpu.memory_space<vmem>> -> memref<1x128xf32, #tpu.memory_space<vmem>>
      %199 = tpu.memref_slice %arg5[%95, %c12_i32_136] : memref<2x16x!tpu.dma_semaphore, #tpu.memory_space<semaphore_mem>> -> memref<1x1x!tpu.dma_semaphore, #tpu.memory_space<semaphore_mem>>
      %200 = tpu.memref_squeeze %199 : memref<1x1x!tpu.dma_semaphore, #tpu.memory_space<semaphore_mem>> -> memref<!tpu.dma_semaphore, #tpu.memory_space<semaphore_mem>>
      tpu.enqueue_dma source(%196 : memref<1x128xf32, #tpu.memory_space<any>>) target(%198 : memref<1x128xf32, #tpu.memory_space<vmem>>) target_semaphore(%200 : memref<!tpu.dma_semaphore, #tpu.memory_space<semaphore_mem>>)
      %c13_i32_140 = arith.constant 13 : i32
      %201 = arith.addi %96, %c13_i32_140 : i32
      %202 = arith.index_cast %201 : i32 to index
      %203 = memref.load %arg1[%202] : memref<32xi32, #tpu.memory_space<smem>>
      %c13_i32_141 = arith.constant 13 : i32
      %c0_i32_142 = arith.constant 0 : i32
      %204 = tpu.memref_slice %arg2[%203, %c0_i32_142] : memref<512x128xf32, #tpu.memory_space<any>> -> memref<1x128xf32, #tpu.memory_space<any>>
      %c13_i32_143 = arith.constant 13 : i32
      %c0_i32_144 = arith.constant 0 : i32
      %205 = tpu.memref_slice %arg4[%95, %c13_i32_143, %c0_i32_144] : memref<2x16x128xf32, #tpu.memory_space<vmem>> -> memref<1x1x128xf32, #tpu.memory_space<vmem>>
      %206 = tpu.memref_squeeze %205 : memref<1x1x128xf32, #tpu.memory_space<vmem>> -> memref<1x128xf32, #tpu.memory_space<vmem>>
      %207 = tpu.memref_slice %arg5[%95, %c13_i32_141] : memref<2x16x!tpu.dma_semaphore, #tpu.memory_space<semaphore_mem>> -> memref<1x1x!tpu.dma_semaphore, #tpu.memory_space<semaphore_mem>>
      %208 = tpu.memref_squeeze %207 : memref<1x1x!tpu.dma_semaphore, #tpu.memory_space<semaphore_mem>> -> memref<!tpu.dma_semaphore, #tpu.memory_space<semaphore_mem>>
      tpu.enqueue_dma source(%204 : memref<1x128xf32, #tpu.memory_space<any>>) target(%206 : memref<1x128xf32, #tpu.memory_space<vmem>>) target_semaphore(%208 : memref<!tpu.dma_semaphore, #tpu.memory_space<semaphore_mem>>)
      %c14_i32_145 = arith.constant 14 : i32
      %209 = arith.addi %96, %c14_i32_145 : i32
      %210 = arith.index_cast %209 : i32 to index
      %211 = memref.load %arg1[%210] : memref<32xi32, #tpu.memory_space<smem>>
      %c14_i32_146 = arith.constant 14 : i32
      %c0_i32_147 = arith.constant 0 : i32
      %212 = tpu.memref_slice %arg2[%211, %c0_i32_147] : memref<512x128xf32, #tpu.memory_space<any>> -> memref<1x128xf32, #tpu.memory_space<any>>
      %c14_i32_148 = arith.constant 14 : i32
      %c0_i32_149 = arith.constant 0 : i32
      %213 = tpu.memref_slice %arg4[%95, %c14_i32_148, %c0_i32_149] : memref<2x16x128xf32, #tpu.memory_space<vmem>> -> memref<1x1x128xf32, #tpu.memory_space<vmem>>
      %214 = tpu.memref_squeeze %213 : memref<1x1x128xf32, #tpu.memory_space<vmem>> -> memref<1x128xf32, #tpu.memory_space<vmem>>
      %215 = tpu.memref_slice %arg5[%95, %c14_i32_146] : memref<2x16x!tpu.dma_semaphore, #tpu.memory_space<semaphore_mem>> -> memref<1x1x!tpu.dma_semaphore, #tpu.memory_space<semaphore_mem>>
      %216 = tpu.memref_squeeze %215 : memref<1x1x!tpu.dma_semaphore, #tpu.memory_space<semaphore_mem>> -> memref<!tpu.dma_semaphore, #tpu.memory_space<semaphore_mem>>
      tpu.enqueue_dma source(%212 : memref<1x128xf32, #tpu.memory_space<any>>) target(%214 : memref<1x128xf32, #tpu.memory_space<vmem>>) target_semaphore(%216 : memref<!tpu.dma_semaphore, #tpu.memory_space<semaphore_mem>>)
      %c15_i32_150 = arith.constant 15 : i32
      %217 = arith.addi %96, %c15_i32_150 : i32
      %218 = arith.index_cast %217 : i32 to index
      %219 = memref.load %arg1[%218] : memref<32xi32, #tpu.memory_space<smem>>
      %c15_i32_151 = arith.constant 15 : i32
      %c0_i32_152 = arith.constant 0 : i32
      %220 = tpu.memref_slice %arg2[%219, %c0_i32_152] : memref<512x128xf32, #tpu.memory_space<any>> -> memref<1x128xf32, #tpu.memory_space<any>>
      %c15_i32_153 = arith.constant 15 : i32
      %c0_i32_154 = arith.constant 0 : i32
      %221 = tpu.memref_slice %arg4[%95, %c15_i32_153, %c0_i32_154] : memref<2x16x128xf32, #tpu.memory_space<vmem>> -> memref<1x1x128xf32, #tpu.memory_space<vmem>>
      %222 = tpu.memref_squeeze %221 : memref<1x1x128xf32, #tpu.memory_space<vmem>> -> memref<1x128xf32, #tpu.memory_space<vmem>>
      %223 = tpu.memref_slice %arg5[%95, %c15_i32_151] : memref<2x16x!tpu.dma_semaphore, #tpu.memory_space<semaphore_mem>> -> memref<1x1x!tpu.dma_semaphore, #tpu.memory_space<semaphore_mem>>
      %224 = tpu.memref_squeeze %223 : memref<1x1x!tpu.dma_semaphore, #tpu.memory_space<semaphore_mem>> -> memref<!tpu.dma_semaphore, #tpu.memory_space<semaphore_mem>>
      tpu.enqueue_dma source(%220 : memref<1x128xf32, #tpu.memory_space<any>>) target(%222 : memref<1x128xf32, #tpu.memory_space<vmem>>) target_semaphore(%224 : memref<!tpu.dma_semaphore, #tpu.memory_space<semaphore_mem>>)
    } else {
    }
    %c0_i32_3 = arith.constant 0 : i32
    %c0_i32_4 = arith.constant 0 : i32
    %c0_i32_5 = arith.constant 0 : i32
    %8 = tpu.memref_slice %arg2[%c0_i32_4, %c0_i32_5] : memref<512x128xf32, #tpu.memory_space<any>> -> memref<1x128xf32, #tpu.memory_space<any>>
    %c0_i32_6 = arith.constant 0 : i32
    %c0_i32_7 = arith.constant 0 : i32
    %9 = tpu.memref_slice %arg4[%0, %c0_i32_6, %c0_i32_7] : memref<2x16x128xf32, #tpu.memory_space<vmem>> -> memref<1x1x128xf32, #tpu.memory_space<vmem>>
    %10 = tpu.memref_squeeze %9 : memref<1x1x128xf32, #tpu.memory_space<vmem>> -> memref<1x128xf32, #tpu.memory_space<vmem>>
    %11 = tpu.memref_slice %arg5[%0, %c0_i32_3] : memref<2x16x!tpu.dma_semaphore, #tpu.memory_space<semaphore_mem>> -> memref<1x1x!tpu.dma_semaphore, #tpu.memory_space<semaphore_mem>>
    %12 = tpu.memref_squeeze %11 : memref<1x1x!tpu.dma_semaphore, #tpu.memory_space<semaphore_mem>> -> memref<!tpu.dma_semaphore, #tpu.memory_space<semaphore_mem>>
    tpu.wait_dma2 semaphore(%12 : memref<!tpu.dma_semaphore, #tpu.memory_space<semaphore_mem>>) src(%8 : memref<1x128xf32, #tpu.memory_space<any>>) dst(%10 : memref<1x128xf32, #tpu.memory_space<vmem>>)
    %c1_i32_8 = arith.constant 1 : i32
    %c0_i32_9 = arith.constant 0 : i32
    %c0_i32_10 = arith.constant 0 : i32
    %13 = tpu.memref_slice %arg2[%c0_i32_9, %c0_i32_10] : memref<512x128xf32, #tpu.memory_space<any>> -> memref<1x128xf32, #tpu.memory_space<any>>
    %c1_i32_11 = arith.constant 1 : i32
    %c0_i32_12 = arith.constant 0 : i32
    %14 = tpu.memref_slice %arg4[%0, %c1_i32_11, %c0_i32_12] : memref<2x16x128xf32, #tpu.memory_space<vmem>> -> memref<1x1x128xf32, #tpu.memory_space<vmem>>
    %15 = tpu.memref_squeeze %14 : memref<1x1x128xf32, #tpu.memory_space<vmem>> -> memref<1x128xf32, #tpu.memory_space<vmem>>
    %16 = tpu.memref_slice %arg5[%0, %c1_i32_8] : memref<2x16x!tpu.dma_semaphore, #tpu.memory_space<semaphore_mem>> -> memref<1x1x!tpu.dma_semaphore, #tpu.memory_space<semaphore_mem>>
    %17 = tpu.memref_squeeze %16 : memref<1x1x!tpu.dma_semaphore, #tpu.memory_space<semaphore_mem>> -> memref<!tpu.dma_semaphore, #tpu.memory_space<semaphore_mem>>
    tpu.wait_dma2 semaphore(%17 : memref<!tpu.dma_semaphore, #tpu.memory_space<semaphore_mem>>) src(%13 : memref<1x128xf32, #tpu.memory_space<any>>) dst(%15 : memref<1x128xf32, #tpu.memory_space<vmem>>)
    %c2_i32_13 = arith.constant 2 : i32
    %c0_i32_14 = arith.constant 0 : i32
    %c0_i32_15 = arith.constant 0 : i32
    %18 = tpu.memref_slice %arg2[%c0_i32_14, %c0_i32_15] : memref<512x128xf32, #tpu.memory_space<any>> -> memref<1x128xf32, #tpu.memory_space<any>>
    %c2_i32_16 = arith.constant 2 : i32
    %c0_i32_17 = arith.constant 0 : i32
    %19 = tpu.memref_slice %arg4[%0, %c2_i32_16, %c0_i32_17] : memref<2x16x128xf32, #tpu.memory_space<vmem>> -> memref<1x1x128xf32, #tpu.memory_space<vmem>>
    %20 = tpu.memref_squeeze %19 : memref<1x1x128xf32, #tpu.memory_space<vmem>> -> memref<1x128xf32, #tpu.memory_space<vmem>>
    %21 = tpu.memref_slice %arg5[%0, %c2_i32_13] : memref<2x16x!tpu.dma_semaphore, #tpu.memory_space<semaphore_mem>> -> memref<1x1x!tpu.dma_semaphore, #tpu.memory_space<semaphore_mem>>
    %22 = tpu.memref_squeeze %21 : memref<1x1x!tpu.dma_semaphore, #tpu.memory_space<semaphore_mem>> -> memref<!tpu.dma_semaphore, #tpu.memory_space<semaphore_mem>>
    tpu.wait_dma2 semaphore(%22 : memref<!tpu.dma_semaphore, #tpu.memory_space<semaphore_mem>>) src(%18 : memref<1x128xf32, #tpu.memory_space<any>>) dst(%20 : memref<1x128xf32, #tpu.memory_space<vmem>>)
    %c3_i32 = arith.constant 3 : i32
    %c0_i32_18 = arith.constant 0 : i32
    %c0_i32_19 = arith.constant 0 : i32
    %23 = tpu.memref_slice %arg2[%c0_i32_18, %c0_i32_19] : memref<512x128xf32, #tpu.memory_space<any>> -> memref<1x128xf32, #tpu.memory_space<any>>
    %c3_i32_20 = arith.constant 3 : i32
    %c0_i32_21 = arith.constant 0 : i32
    %24 = tpu.memref_slice %arg4[%0, %c3_i32_20, %c0_i32_21] : memref<2x16x128xf32, #tpu.memory_space<vmem>> -> memref<1x1x128xf32, #tpu.memory_space<vmem>>
    %25 = tpu.memref_squeeze %24 : memref<1x1x128xf32, #tpu.memory_space<vmem>> -> memref<1x128xf32, #tpu.memory_space<vmem>>
    %26 = tpu.memref_slice %arg5[%0, %c3_i32] : memref<2x16x!tpu.dma_semaphore, #tpu.memory_space<semaphore_mem>> -> memref<1x1x!tpu.dma_semaphore, #tpu.memory_space<semaphore_mem>>
    %27 = tpu.memref_squeeze %26 : memref<1x1x!tpu.dma_semaphore, #tpu.memory_space<semaphore_mem>> -> memref<!tpu.dma_semaphore, #tpu.memory_space<semaphore_mem>>
    tpu.wait_dma2 semaphore(%27 : memref<!tpu.dma_semaphore, #tpu.memory_space<semaphore_mem>>) src(%23 : memref<1x128xf32, #tpu.memory_space<any>>) dst(%25 : memref<1x128xf32, #tpu.memory_space<vmem>>)
    %c4_i32 = arith.constant 4 : i32
    %c0_i32_22 = arith.constant 0 : i32
    %c0_i32_23 = arith.constant 0 : i32
    %28 = tpu.memref_slice %arg2[%c0_i32_22, %c0_i32_23] : memref<512x128xf32, #tpu.memory_space<any>> -> memref<1x128xf32, #tpu.memory_space<any>>
    %c4_i32_24 = arith.constant 4 : i32
    %c0_i32_25 = arith.constant 0 : i32
    %29 = tpu.memref_slice %arg4[%0, %c4_i32_24, %c0_i32_25] : memref<2x16x128xf32, #tpu.memory_space<vmem>> -> memref<1x1x128xf32, #tpu.memory_space<vmem>>
    %30 = tpu.memref_squeeze %29 : memref<1x1x128xf32, #tpu.memory_space<vmem>> -> memref<1x128xf32, #tpu.memory_space<vmem>>
    %31 = tpu.memref_slice %arg5[%0, %c4_i32] : memref<2x16x!tpu.dma_semaphore, #tpu.memory_space<semaphore_mem>> -> memref<1x1x!tpu.dma_semaphore, #tpu.memory_space<semaphore_mem>>
    %32 = tpu.memref_squeeze %31 : memref<1x1x!tpu.dma_semaphore, #tpu.memory_space<semaphore_mem>> -> memref<!tpu.dma_semaphore, #tpu.memory_space<semaphore_mem>>
    tpu.wait_dma2 semaphore(%32 : memref<!tpu.dma_semaphore, #tpu.memory_space<semaphore_mem>>) src(%28 : memref<1x128xf32, #tpu.memory_space<any>>) dst(%30 : memref<1x128xf32, #tpu.memory_space<vmem>>)
    %c5_i32 = arith.constant 5 : i32
    %c0_i32_26 = arith.constant 0 : i32
    %c0_i32_27 = arith.constant 0 : i32
    %33 = tpu.memref_slice %arg2[%c0_i32_26, %c0_i32_27] : memref<512x128xf32, #tpu.memory_space<any>> -> memref<1x128xf32, #tpu.memory_space<any>>
    %c5_i32_28 = arith.constant 5 : i32
    %c0_i32_29 = arith.constant 0 : i32
    %34 = tpu.memref_slice %arg4[%0, %c5_i32_28, %c0_i32_29] : memref<2x16x128xf32, #tpu.memory_space<vmem>> -> memref<1x1x128xf32, #tpu.memory_space<vmem>>
    %35 = tpu.memref_squeeze %34 : memref<1x1x128xf32, #tpu.memory_space<vmem>> -> memref<1x128xf32, #tpu.memory_space<vmem>>
    %36 = tpu.memref_slice %arg5[%0, %c5_i32] : memref<2x16x!tpu.dma_semaphore, #tpu.memory_space<semaphore_mem>> -> memref<1x1x!tpu.dma_semaphore, #tpu.memory_space<semaphore_mem>>
    %37 = tpu.memref_squeeze %36 : memref<1x1x!tpu.dma_semaphore, #tpu.memory_space<semaphore_mem>> -> memref<!tpu.dma_semaphore, #tpu.memory_space<semaphore_mem>>
    tpu.wait_dma2 semaphore(%37 : memref<!tpu.dma_semaphore, #tpu.memory_space<semaphore_mem>>) src(%33 : memref<1x128xf32, #tpu.memory_space<any>>) dst(%35 : memref<1x128xf32, #tpu.memory_space<vmem>>)
    %c6_i32 = arith.constant 6 : i32
    %c0_i32_30 = arith.constant 0 : i32
    %c0_i32_31 = arith.constant 0 : i32
    %38 = tpu.memref_slice %arg2[%c0_i32_30, %c0_i32_31] : memref<512x128xf32, #tpu.memory_space<any>> -> memref<1x128xf32, #tpu.memory_space<any>>
    %c6_i32_32 = arith.constant 6 : i32
    %c0_i32_33 = arith.constant 0 : i32
    %39 = tpu.memref_slice %arg4[%0, %c6_i32_32, %c0_i32_33] : memref<2x16x128xf32, #tpu.memory_space<vmem>> -> memref<1x1x128xf32, #tpu.memory_space<vmem>>
    %40 = tpu.memref_squeeze %39 : memref<1x1x128xf32, #tpu.memory_space<vmem>> -> memref<1x128xf32, #tpu.memory_space<vmem>>
    %41 = tpu.memref_slice %arg5[%0, %c6_i32] : memref<2x16x!tpu.dma_semaphore, #tpu.memory_space<semaphore_mem>> -> memref<1x1x!tpu.dma_semaphore, #tpu.memory_space<semaphore_mem>>
    %42 = tpu.memref_squeeze %41 : memref<1x1x!tpu.dma_semaphore, #tpu.memory_space<semaphore_mem>> -> memref<!tpu.dma_semaphore, #tpu.memory_space<semaphore_mem>>
    tpu.wait_dma2 semaphore(%42 : memref<!tpu.dma_semaphore, #tpu.memory_space<semaphore_mem>>) src(%38 : memref<1x128xf32, #tpu.memory_space<any>>) dst(%40 : memref<1x128xf32, #tpu.memory_space<vmem>>)
    %c7_i32 = arith.constant 7 : i32
    %c0_i32_34 = arith.constant 0 : i32
    %c0_i32_35 = arith.constant 0 : i32
    %43 = tpu.memref_slice %arg2[%c0_i32_34, %c0_i32_35] : memref<512x128xf32, #tpu.memory_space<any>> -> memref<1x128xf32, #tpu.memory_space<any>>
    %c7_i32_36 = arith.constant 7 : i32
    %c0_i32_37 = arith.constant 0 : i32
    %44 = tpu.memref_slice %arg4[%0, %c7_i32_36, %c0_i32_37] : memref<2x16x128xf32, #tpu.memory_space<vmem>> -> memref<1x1x128xf32, #tpu.memory_space<vmem>>
    %45 = tpu.memref_squeeze %44 : memref<1x1x128xf32, #tpu.memory_space<vmem>> -> memref<1x128xf32, #tpu.memory_space<vmem>>
    %46 = tpu.memref_slice %arg5[%0, %c7_i32] : memref<2x16x!tpu.dma_semaphore, #tpu.memory_space<semaphore_mem>> -> memref<1x1x!tpu.dma_semaphore, #tpu.memory_space<semaphore_mem>>
    %47 = tpu.memref_squeeze %46 : memref<1x1x!tpu.dma_semaphore, #tpu.memory_space<semaphore_mem>> -> memref<!tpu.dma_semaphore, #tpu.memory_space<semaphore_mem>>
    tpu.wait_dma2 semaphore(%47 : memref<!tpu.dma_semaphore, #tpu.memory_space<semaphore_mem>>) src(%43 : memref<1x128xf32, #tpu.memory_space<any>>) dst(%45 : memref<1x128xf32, #tpu.memory_space<vmem>>)
    %c8_i32 = arith.constant 8 : i32
    %c0_i32_38 = arith.constant 0 : i32
    %c0_i32_39 = arith.constant 0 : i32
    %48 = tpu.memref_slice %arg2[%c0_i32_38, %c0_i32_39] : memref<512x128xf32, #tpu.memory_space<any>> -> memref<1x128xf32, #tpu.memory_space<any>>
    %c8_i32_40 = arith.constant 8 : i32
    %c0_i32_41 = arith.constant 0 : i32
    %49 = tpu.memref_slice %arg4[%0, %c8_i32_40, %c0_i32_41] : memref<2x16x128xf32, #tpu.memory_space<vmem>> -> memref<1x1x128xf32, #tpu.memory_space<vmem>>
    %50 = tpu.memref_squeeze %49 : memref<1x1x128xf32, #tpu.memory_space<vmem>> -> memref<1x128xf32, #tpu.memory_space<vmem>>
    %51 = tpu.memref_slice %arg5[%0, %c8_i32] : memref<2x16x!tpu.dma_semaphore, #tpu.memory_space<semaphore_mem>> -> memref<1x1x!tpu.dma_semaphore, #tpu.memory_space<semaphore_mem>>
    %52 = tpu.memref_squeeze %51 : memref<1x1x!tpu.dma_semaphore, #tpu.memory_space<semaphore_mem>> -> memref<!tpu.dma_semaphore, #tpu.memory_space<semaphore_mem>>
    tpu.wait_dma2 semaphore(%52 : memref<!tpu.dma_semaphore, #tpu.memory_space<semaphore_mem>>) src(%48 : memref<1x128xf32, #tpu.memory_space<any>>) dst(%50 : memref<1x128xf32, #tpu.memory_space<vmem>>)
    %c9_i32 = arith.constant 9 : i32
    %c0_i32_42 = arith.constant 0 : i32
    %c0_i32_43 = arith.constant 0 : i32
    %53 = tpu.memref_slice %arg2[%c0_i32_42, %c0_i32_43] : memref<512x128xf32, #tpu.memory_space<any>> -> memref<1x128xf32, #tpu.memory_space<any>>
    %c9_i32_44 = arith.constant 9 : i32
    %c0_i32_45 = arith.constant 0 : i32
    %54 = tpu.memref_slice %arg4[%0, %c9_i32_44, %c0_i32_45] : memref<2x16x128xf32, #tpu.memory_space<vmem>> -> memref<1x1x128xf32, #tpu.memory_space<vmem>>
    %55 = tpu.memref_squeeze %54 : memref<1x1x128xf32, #tpu.memory_space<vmem>> -> memref<1x128xf32, #tpu.memory_space<vmem>>
    %56 = tpu.memref_slice %arg5[%0, %c9_i32] : memref<2x16x!tpu.dma_semaphore, #tpu.memory_space<semaphore_mem>> -> memref<1x1x!tpu.dma_semaphore, #tpu.memory_space<semaphore_mem>>
    %57 = tpu.memref_squeeze %56 : memref<1x1x!tpu.dma_semaphore, #tpu.memory_space<semaphore_mem>> -> memref<!tpu.dma_semaphore, #tpu.memory_space<semaphore_mem>>
    tpu.wait_dma2 semaphore(%57 : memref<!tpu.dma_semaphore, #tpu.memory_space<semaphore_mem>>) src(%53 : memref<1x128xf32, #tpu.memory_space<any>>) dst(%55 : memref<1x128xf32, #tpu.memory_space<vmem>>)
    %c10_i32 = arith.constant 10 : i32
    %c0_i32_46 = arith.constant 0 : i32
    %c0_i32_47 = arith.constant 0 : i32
    %58 = tpu.memref_slice %arg2[%c0_i32_46, %c0_i32_47] : memref<512x128xf32, #tpu.memory_space<any>> -> memref<1x128xf32, #tpu.memory_space<any>>
    %c10_i32_48 = arith.constant 10 : i32
    %c0_i32_49 = arith.constant 0 : i32
    %59 = tpu.memref_slice %arg4[%0, %c10_i32_48, %c0_i32_49] : memref<2x16x128xf32, #tpu.memory_space<vmem>> -> memref<1x1x128xf32, #tpu.memory_space<vmem>>
    %60 = tpu.memref_squeeze %59 : memref<1x1x128xf32, #tpu.memory_space<vmem>> -> memref<1x128xf32, #tpu.memory_space<vmem>>
    %61 = tpu.memref_slice %arg5[%0, %c10_i32] : memref<2x16x!tpu.dma_semaphore, #tpu.memory_space<semaphore_mem>> -> memref<1x1x!tpu.dma_semaphore, #tpu.memory_space<semaphore_mem>>
    %62 = tpu.memref_squeeze %61 : memref<1x1x!tpu.dma_semaphore, #tpu.memory_space<semaphore_mem>> -> memref<!tpu.dma_semaphore, #tpu.memory_space<semaphore_mem>>
    tpu.wait_dma2 semaphore(%62 : memref<!tpu.dma_semaphore, #tpu.memory_space<semaphore_mem>>) src(%58 : memref<1x128xf32, #tpu.memory_space<any>>) dst(%60 : memref<1x128xf32, #tpu.memory_space<vmem>>)
    %c11_i32 = arith.constant 11 : i32
    %c0_i32_50 = arith.constant 0 : i32
    %c0_i32_51 = arith.constant 0 : i32
    %63 = tpu.memref_slice %arg2[%c0_i32_50, %c0_i32_51] : memref<512x128xf32, #tpu.memory_space<any>> -> memref<1x128xf32, #tpu.memory_space<any>>
    %c11_i32_52 = arith.constant 11 : i32
    %c0_i32_53 = arith.constant 0 : i32
    %64 = tpu.memref_slice %arg4[%0, %c11_i32_52, %c0_i32_53] : memref<2x16x128xf32, #tpu.memory_space<vmem>> -> memref<1x1x128xf32, #tpu.memory_space<vmem>>
    %65 = tpu.memref_squeeze %64 : memref<1x1x128xf32, #tpu.memory_space<vmem>> -> memref<1x128xf32, #tpu.memory_space<vmem>>
    %66 = tpu.memref_slice %arg5[%0, %c11_i32] : memref<2x16x!tpu.dma_semaphore, #tpu.memory_space<semaphore_mem>> -> memref<1x1x!tpu.dma_semaphore, #tpu.memory_space<semaphore_mem>>
    %67 = tpu.memref_squeeze %66 : memref<1x1x!tpu.dma_semaphore, #tpu.memory_space<semaphore_mem>> -> memref<!tpu.dma_semaphore, #tpu.memory_space<semaphore_mem>>
    tpu.wait_dma2 semaphore(%67 : memref<!tpu.dma_semaphore, #tpu.memory_space<semaphore_mem>>) src(%63 : memref<1x128xf32, #tpu.memory_space<any>>) dst(%65 : memref<1x128xf32, #tpu.memory_space<vmem>>)
    %c12_i32 = arith.constant 12 : i32
    %c0_i32_54 = arith.constant 0 : i32
    %c0_i32_55 = arith.constant 0 : i32
    %68 = tpu.memref_slice %arg2[%c0_i32_54, %c0_i32_55] : memref<512x128xf32, #tpu.memory_space<any>> -> memref<1x128xf32, #tpu.memory_space<any>>
    %c12_i32_56 = arith.constant 12 : i32
    %c0_i32_57 = arith.constant 0 : i32
    %69 = tpu.memref_slice %arg4[%0, %c12_i32_56, %c0_i32_57] : memref<2x16x128xf32, #tpu.memory_space<vmem>> -> memref<1x1x128xf32, #tpu.memory_space<vmem>>
    %70 = tpu.memref_squeeze %69 : memref<1x1x128xf32, #tpu.memory_space<vmem>> -> memref<1x128xf32, #tpu.memory_space<vmem>>
    %71 = tpu.memref_slice %arg5[%0, %c12_i32] : memref<2x16x!tpu.dma_semaphore, #tpu.memory_space<semaphore_mem>> -> memref<1x1x!tpu.dma_semaphore, #tpu.memory_space<semaphore_mem>>
    %72 = tpu.memref_squeeze %71 : memref<1x1x!tpu.dma_semaphore, #tpu.memory_space<semaphore_mem>> -> memref<!tpu.dma_semaphore, #tpu.memory_space<semaphore_mem>>
    tpu.wait_dma2 semaphore(%72 : memref<!tpu.dma_semaphore, #tpu.memory_space<semaphore_mem>>) src(%68 : memref<1x128xf32, #tpu.memory_space<any>>) dst(%70 : memref<1x128xf32, #tpu.memory_space<vmem>>)
    %c13_i32 = arith.constant 13 : i32
    %c0_i32_58 = arith.constant 0 : i32
    %c0_i32_59 = arith.constant 0 : i32
    %73 = tpu.memref_slice %arg2[%c0_i32_58, %c0_i32_59] : memref<512x128xf32, #tpu.memory_space<any>> -> memref<1x128xf32, #tpu.memory_space<any>>
    %c13_i32_60 = arith.constant 13 : i32
    %c0_i32_61 = arith.constant 0 : i32
    %74 = tpu.memref_slice %arg4[%0, %c13_i32_60, %c0_i32_61] : memref<2x16x128xf32, #tpu.memory_space<vmem>> -> memref<1x1x128xf32, #tpu.memory_space<vmem>>
    %75 = tpu.memref_squeeze %74 : memref<1x1x128xf32, #tpu.memory_space<vmem>> -> memref<1x128xf32, #tpu.memory_space<vmem>>
    %76 = tpu.memref_slice %arg5[%0, %c13_i32] : memref<2x16x!tpu.dma_semaphore, #tpu.memory_space<semaphore_mem>> -> memref<1x1x!tpu.dma_semaphore, #tpu.memory_space<semaphore_mem>>
    %77 = tpu.memref_squeeze %76 : memref<1x1x!tpu.dma_semaphore, #tpu.memory_space<semaphore_mem>> -> memref<!tpu.dma_semaphore, #tpu.memory_space<semaphore_mem>>
    tpu.wait_dma2 semaphore(%77 : memref<!tpu.dma_semaphore, #tpu.memory_space<semaphore_mem>>) src(%73 : memref<1x128xf32, #tpu.memory_space<any>>) dst(%75 : memref<1x128xf32, #tpu.memory_space<vmem>>)
    %c14_i32 = arith.constant 14 : i32
    %c0_i32_62 = arith.constant 0 : i32
    %c0_i32_63 = arith.constant 0 : i32
    %78 = tpu.memref_slice %arg2[%c0_i32_62, %c0_i32_63] : memref<512x128xf32, #tpu.memory_space<any>> -> memref<1x128xf32, #tpu.memory_space<any>>
    %c14_i32_64 = arith.constant 14 : i32
    %c0_i32_65 = arith.constant 0 : i32
    %79 = tpu.memref_slice %arg4[%0, %c14_i32_64, %c0_i32_65] : memref<2x16x128xf32, #tpu.memory_space<vmem>> -> memref<1x1x128xf32, #tpu.memory_space<vmem>>
    %80 = tpu.memref_squeeze %79 : memref<1x1x128xf32, #tpu.memory_space<vmem>> -> memref<1x128xf32, #tpu.memory_space<vmem>>
    %81 = tpu.memref_slice %arg5[%0, %c14_i32] : memref<2x16x!tpu.dma_semaphore, #tpu.memory_space<semaphore_mem>> -> memref<1x1x!tpu.dma_semaphore, #tpu.memory_space<semaphore_mem>>
    %82 = tpu.memref_squeeze %81 : memref<1x1x!tpu.dma_semaphore, #tpu.memory_space<semaphore_mem>> -> memref<!tpu.dma_semaphore, #tpu.memory_space<semaphore_mem>>
    tpu.wait_dma2 semaphore(%82 : memref<!tpu.dma_semaphore, #tpu.memory_space<semaphore_mem>>) src(%78 : memref<1x128xf32, #tpu.memory_space<any>>) dst(%80 : memref<1x128xf32, #tpu.memory_space<vmem>>)
    %c15_i32 = arith.constant 15 : i32
    %c0_i32_66 = arith.constant 0 : i32
    %c0_i32_67 = arith.constant 0 : i32
    %83 = tpu.memref_slice %arg2[%c0_i32_66, %c0_i32_67] : memref<512x128xf32, #tpu.memory_space<any>> -> memref<1x128xf32, #tpu.memory_space<any>>
    %c15_i32_68 = arith.constant 15 : i32
    %c0_i32_69 = arith.constant 0 : i32
    %84 = tpu.memref_slice %arg4[%0, %c15_i32_68, %c0_i32_69] : memref<2x16x128xf32, #tpu.memory_space<vmem>> -> memref<1x1x128xf32, #tpu.memory_space<vmem>>
    %85 = tpu.memref_squeeze %84 : memref<1x1x128xf32, #tpu.memory_space<vmem>> -> memref<1x128xf32, #tpu.memory_space<vmem>>
    %86 = tpu.memref_slice %arg5[%0, %c15_i32] : memref<2x16x!tpu.dma_semaphore, #tpu.memory_space<semaphore_mem>> -> memref<1x1x!tpu.dma_semaphore, #tpu.memory_space<semaphore_mem>>
    %87 = tpu.memref_squeeze %86 : memref<1x1x!tpu.dma_semaphore, #tpu.memory_space<semaphore_mem>> -> memref<!tpu.dma_semaphore, #tpu.memory_space<semaphore_mem>>
    tpu.wait_dma2 semaphore(%87 : memref<!tpu.dma_semaphore, #tpu.memory_space<semaphore_mem>>) src(%83 : memref<1x128xf32, #tpu.memory_space<any>>) dst(%85 : memref<1x128xf32, #tpu.memory_space<vmem>>)
    %88 = arith.index_cast %0 : i32 to index
    %c0 = arith.constant 0 : index
    %c0_70 = arith.constant 0 : index
    %89 = vector.load %arg4[%88, %c0, %c0_70] : memref<2x16x128xf32, #tpu.memory_space<vmem>>, vector<1x16x128xf32>
    %90 = vector.shape_cast %89 : vector<1x16x128xf32> to vector<16x128xf32>
    %cst = arith.constant 11.3137083 : f32
    %91 = vector.broadcast %cst : f32 to vector<16x128xf32>
    %92 = arith.mulf %90, %91 : vector<16x128xf32>
    %c0_71 = arith.constant 0 : index
    %c0_72 = arith.constant 0 : index
    %93 = vector.load %arg3[%c0_71, %c0_72] : memref<16x128xf32, #tpu.memory_space<vmem>>, vector<16x128xf32>
    tpu.vector_store %arg3[%c0_71, %c0_72], %92 {strides = array<i32>} : memref<16x128xf32, #tpu.memory_space<vmem>>, vector<16x128xf32>,
    return
  }
  func.func @transform_1(%arg0: i32, %arg1: memref<32xi32, #tpu.memory_space<smem>>) -> (i32, i32) {
    %c0_i32 = arith.constant 0 : i32
    %c0_i32_0 = arith.constant 0 : i32
    return %arg0, %c0_i32 : i32, i32
  }
}

</mosaic_0001>

<bundles_post_ra>
// kernel: tpu_custom_call.1
= control target key start
LH: loop header
LB: loop body
LE: loop exit
PB: predicated region body
PF: predicated region fallthrough
CT: control target
= control target key end

     0   :  { %s2285_s12 = smov [#allocation5]   ;;  %s2901_s0 = inlined_call_operand.hbm [shape: s32[32], index: 0, kind: input, shape index: {}]   ;;  %s2902_s1 = inlined_call_operand.hbm [shape: f32[512,128], index: 1, kind: input, shape index: {}]   ;;  %s2903_s2 = inlined_call_operand.hbm [shape: f32[32,128], index: 2, kind: output, shape index: {}]  }
   0x1   :  { %s8_s11 = sshll.u32 %s2901_s0, 4  ;;  %s9_s11 = int_to_ptr.hbm [resolvable:$true] %s8_s11 }
   0x2   :  { %11 = dma.hbm_to_smem %s9_s11, 16, %s2285_s12, [#allocation4] }
   0x3   :  { %2235 = dma.done.wait [#allocation4], 16 }
   0x4   :  { %2236 = vsyncadd [#allocation4], 4294967280 }
   0x5   :  { %14 = sfence }
   0x6   :  { %15 = vsyncpa [#allocation7], 0 }
   0x7   :  { %17 = vsyncpa [#allocation7 + $0x1], 0  ;;  %s2322_s13 = smov 0   ;;  %s2324_s14 = smov 0  }
   0x8   :  { %s2326_s15 = smov 0  }
   0x9 LB: > { %s1174_s0 = sadd.s32 4294967295, %s2283_s15   ;;  %s2339_s16 = sadd.s32 1, %s2283_s15   ;;  %s2283_s15 = sphi %s2326_s15, %s2931_s15   ;;  %s2279_s14 = sphi %s2324_s14, %s2930_s14   ;;  %s2275_s13 = sphi %s2322_s13, %s2929_s13  }
   0xa   : > { %s26_s17 = ssub.s32 %s2283_s15, %s2339_s16  ;;  %s29_s18 = sadd.s32 1, %s2279_s14 }
   0xb   : > { %p27_p0 = scmp.eq.s32.totalorder %s26_s17, 0  ;;  %p1175_p1 = scmp.ne.s32.totalorder %s26_s17, 0 }
   0xc   : > { %p33_p2 = scmp.eq.s32.totalorder %s2283_s15, 1  ;;  %p38_p3 = scmp.ne.s32.totalorder %s2279_s14, %s2275_s13 }
   0xd   : > { %s2348_s19 = scalar_select %p27_p0, %s2279_s14, %s29_s18  }
   0xe   : > { %p2350_p4 = por %p1175_p1, %p33_p2  ;;  %p39_p5 = scmp.eq.s32.totalorder %s1174_s0, 1 }
   0xf   : > { %p1176_p7 = scmp.ge.s32.totalorder %s2283_s15, 2 }
  0x10   : > { %p2354_p6 = por %p39_p5, %p38_p3  ;;  %s2904_s22 = sand.u32 (!%p1176_p7), 1, %s2279_s14  }
  0x11   : > { %48 = sbr.rel (%p1176_p7) target bundleno = 526 (0x20e), region = 12  ;;  %s2905_s23 = sand.u32 (!%p1176_p7), 1, %s2283_s15 }
  0x12   : > { %s2363_s24 = sshll.u32 (!%p1176_p7), %s2904_s22, 4  ;;  %p1306_p8 = scmp.eq.s32.totalorder (!%p1176_p7), %s2283_s15, 0 }
  0x13   : > { %s62_s25 = sld [smem:[#allocation5]] (!%p1176_p7)  ;;  %s2286_s26 = smov (!%p1176_p7), [#allocation2]  }
  0x14   : > { %s2366_s27 = sshll.u32 (!%p1176_p7), %s2286_s26, 4  ;;  %s1179_s28 = sld [smem:[#allocation5 + $0x1]] (!%p1176_p7)  ;;  %s74_s27 = int_to_ptr.vmem [resolvable:$true] %s2366_s27 }
  0x15   : > { %s2287_s29 = smov (!%p1176_p7), [#allocation2 + $0x1]   ;;  %s2371_s3 = sld [smem:[#allocation5 + $0x2]] (!%p1176_p7) }
  0x16   : > { %s2369_s30 = sshll.u32 %s2287_s29, 4  ;;  %s2288_s4 = smov [#allocation2 + $0x2]   ;;  %s91_s30 = int_to_ptr.vmem [resolvable:$true] %s2369_s30 }
  0x17   : > { %s2374_s5 = sshll.u32 %s2288_s4, 4  ;;  %s2376_s6 = sld [smem:[#allocation5 + $0x3]]  ;;  %s108_s5 = int_to_ptr.vmem [resolvable:$true] %s2374_s5 }
  0x18   : > { %s2390_s7 = scalar_lea.hbm %s2902_s1, 512 }
  0x19   : > { %s63_s9 = scalar_lea.hbm %s2902_s1, %s62_s25 }
  0x1a   : > { %s71_s10 = sshll.u32 %s63_s9, 4  ;;  %s78_s0 = scalar_lea.hbm %s2902_s1, %s1179_s28  ;;  %s72_s10 = int_to_ptr.hbm [resolvable:$true] %s71_s10 }
  0x1b   : > { %s88_s17 = sshll.u32 %s78_s0, 4  ;;  %s1363_s18 = sshra.s32 %s72_s10, 4  ;;  %s1364_s18 = int_to_ptr.hbm [resolvable:$true] %s1363_s18  ;;  %s89_s17 = int_to_ptr.hbm [resolvable:$true] %s88_s17 }
  0x1c   : > { %s1365_s26 = scalar_lea.hbm %s1364_s18, 1  ;;  %p1370_p12 = scmp.lt.s32.totalorder %s1364_s18, %s2902_s1 }
  0x1d   : > { %p1366_p9 = scmp.ne.s32.totalorder %s1364_s18, %s1365_s26  ;;  %p1371_p13 = scmp.lt.s32.totalorder %s2390_s7, %s1365_s26 }
  0x1f   : > { %p1367_p10 = pnand %p1366_p9, %p1306_p8  ;;  %p1372_p0 = por %p1371_p13, %p1370_p12 }
  0x21   : > { %p1368_p11 = pneg %p1367_p10 }
  0x23   : > { %p1373_p1 = pnand %p1372_p0, %p1368_p11 }
  0x25   : > { %1376 = shalt.err (!%p1373_p1)  }
  0x26   : > { %1284 = dma.hbm_to_vmem [thread:$0]  (%p1306_p8), %s72_s10, 16, %s74_s27, [#allocation3] }
  0x27   : > { %s95_s11 = scalar_lea.hbm %s2902_s1, %s2371_s3  ;;  %s1391_s12 = sshra.s32 %s89_s17, 4  ;;  %s1392_s12 = int_to_ptr.hbm [resolvable:$true] %s1391_s12 }
  0x28   : > { %s1393_s0 = scalar_lea.hbm %s1392_s12, 1  ;;  %p1398_p7 = scmp.lt.s32.totalorder %s1392_s12, %s2902_s1 }
  0x29   : > { %p1394_p2 = scmp.ne.s32.totalorder %s1392_s12, %s1393_s0  ;;  %p1399_p9 = scmp.lt.s32.totalorder %s2390_s7, %s1393_s0 }
  0x2b   : > { %p1395_p3 = pnand %p1394_p2, %p1306_p8  ;;  %p1400_p10 = por %p1399_p9, %p1398_p7 }
  0x2d   : > { %p1396_p5 = pneg %p1395_p3 }
  0x2f   : > { %p1401_p11 = pnand %p1400_p10, %p1396_p5 }
  0x31   : > { %1404 = shalt.err (!%p1401_p11)  }
  0x32   : > { %1285 = dma.hbm_to_vmem [thread:$0]  (%p1306_p8), %s89_s17, 16, %s91_s30, [#allocation3 + $0x1] }
  0x33   : > { %s105_s27 = sshll.u32 %s95_s11, 4  ;;  %s112_s29 = scalar_lea.hbm %s2902_s1, %s2376_s6  ;;  %s106_s27 = int_to_ptr.hbm [resolvable:$true] %s105_s27 }
  0x34   : > { %s2416_s4 = sshll.u32 %s112_s29, 4  ;;  %s1419_s25 = sshra.s32 %s106_s27, 4  ;;  %s1420_s25 = int_to_ptr.hbm [resolvable:$true] %s1419_s25  ;;  %s123_s4 = int_to_ptr.hbm [resolvable:$true] %s2416_s4 }
  0x35   : > { %s1421_s8 = scalar_lea.hbm %s1420_s25, 1  ;;  %p1426_p1 = scmp.lt.s32.totalorder %s1420_s25, %s2902_s1 }
  0x36   : > { %p1422_p12 = scmp.ne.s32.totalorder %s1420_s25, %s1421_s8  ;;  %p1427_p2 = scmp.lt.s32.totalorder %s2390_s7, %s1421_s8 }
  0x38   : > { %p1423_p13 = pnand %p1422_p12, %p1306_p8  ;;  %p1428_p3 = por %p1427_p2, %p1426_p1 }
  0x3a   : > { %p1424_p0 = pneg %p1423_p13 }
  0x3c   : > { %p1429_p5 = pnand %p1428_p3, %p1424_p0 }
  0x3e   : > { %1432 = shalt.err (!%p1429_p5)  }
  0x3f   : > { %1286 = dma.hbm_to_vmem [thread:$0]  (%p1306_p8), %s106_s27, 16, %s108_s5, [#allocation3 + $0x2] }
  0x40   : > { %s2289_s30 = smov [#allocation2 + $0x3]   ;;  %s1182_s17 = sld [smem:[#allocation5 + $0x4]] }
  0x41   : > { %s124_s6 = sshll.u32 %s2289_s30, 4  ;;  %s1447_s11 = sshra.s32 %s123_s4, 4  ;;  %s125_s6 = int_to_ptr.vmem [resolvable:$true] %s124_s6  ;;  %s1448_s11 = int_to_ptr.hbm [resolvable:$true] %s1447_s11 }
  0x42   : > { %s1449_s12 = scalar_lea.hbm %s1448_s11, 1  ;;  %p1454_p11 = scmp.lt.s32.totalorder %s1448_s11, %s2902_s1 }
  0x43   : > { %p1450_p7 = scmp.ne.s32.totalorder %s1448_s11, %s1449_s12  ;;  %p1455_p12 = scmp.lt.s32.totalorder %s2390_s7, %s1449_s12 }
  0x45   : > { %p1451_p9 = pnand %p1450_p7, %p1306_p8  ;;  %p1456_p13 = por %p1455_p12, %p1454_p11 }
  0x47   : > { %p1452_p10 = pneg %p1451_p9 }
  0x49   : > { %p1457_p0 = pnand %p1456_p13, %p1452_p10 }
  0x4b   : > { %1460 = shalt.err (!%p1457_p0)  }
  0x4c   : > { %1287 = dma.hbm_to_vmem [thread:$0]  (%p1306_p8), %s123_s4, 16, %s125_s6, [#allocation3 + $0x3] }
  0x4d   : > { %s2290_s5 = smov [#allocation2 + $0x4]   ;;  %s1183_s27 = sld [smem:[#allocation5 + $0x5]] }
  0x4e   : > { %s141_s26 = sshll.u32 %s2290_s5, 4  ;;  %s2291_s3 = smov [#allocation2 + $0x5]   ;;  %s142_s26 = int_to_ptr.vmem [resolvable:$true] %s141_s26 }
  0x4f   : > { %s2437_s10 = sshll.u32 %s2291_s3, 4  ;;  %s1184_s29 = sld [smem:[#allocation5 + $0x6]]  ;;  %s159_s10 = int_to_ptr.vmem [resolvable:$true] %s2437_s10 }
  0x50   : > { %s129_s28 = scalar_lea.hbm %s2902_s1, %s1182_s17  ;;  %s2292_s30 = smov [#allocation2 + $0x6]  }
  0x51   : > { %s139_s9 = sshll.u32 %s129_s28, 4  ;;  %s2443_s4 = sshll.u32 %s2292_s30, 4  ;;  %s140_s9 = int_to_ptr.hbm [resolvable:$true] %s139_s9  ;;  %s176_s4 = int_to_ptr.vmem [resolvable:$true] %s2443_s4 }
  0x52   : > { %s1475_s6 = sshra.s32 %s140_s9, 4  ;;  %s1476_s6 = int_to_ptr.hbm [resolvable:$true] %s1475_s6 }
  0x53   : > { %s1477_s11 = scalar_lea.hbm %s1476_s6, 1  ;;  %p1482_p5 = scmp.lt.s32.totalorder %s1476_s6, %s2902_s1 }
  0x54   : > { %p1478_p1 = scmp.ne.s32.totalorder %s1476_s6, %s1477_s11  ;;  %p1483_p7 = scmp.lt.s32.totalorder %s2390_s7, %s1477_s11 }
  0x56   : > { %p1479_p2 = pnand %p1478_p1, %p1306_p8  ;;  %p1484_p9 = por %p1483_p7, %p1482_p5 }
  0x58   : > { %p1480_p3 = pneg %p1479_p2 }
  0x5a   : > { %p1485_p10 = pnand %p1484_p9, %p1480_p3 }
  0x5c   : > { %1488 = shalt.err (!%p1485_p10)  }
  0x5d   : > { %1288 = dma.hbm_to_vmem [thread:$0]  (%p1306_p8), %s140_s9, 16, %s142_s26, [#allocation3 + $0x4] }
  0x5e   : > { %s146_s5 = scalar_lea.hbm %s2902_s1, %s1183_s27  ;;  %s163_s28 = scalar_lea.hbm %s2902_s1, %s1184_s29 }
  0x5f   : > { %s156_s3 = sshll.u32 %s146_s5, 4  ;;  %s173_s30 = sshll.u32 %s163_s28, 4  ;;  %s157_s3 = int_to_ptr.hbm [resolvable:$true] %s156_s3  ;;  %s174_s30 = int_to_ptr.hbm [resolvable:$true] %s173_s30 }
  0x60   : > { %s1503_s6 = sshra.s32 %s157_s3, 4  ;;  %s1504_s6 = int_to_ptr.hbm [resolvable:$true] %s1503_s6 }
  0x61   : > { %s1505_s11 = scalar_lea.hbm %s1504_s6, 1  ;;  %p1510_p0 = scmp.lt.s32.totalorder %s1504_s6, %s2902_s1 }
  0x62   : > { %p1506_p11 = scmp.ne.s32.totalorder %s1504_s6, %s1505_s11  ;;  %p1511_p1 = scmp.lt.s32.totalorder %s2390_s7, %s1505_s11 }
  0x64   : > { %p1507_p12 = pnand %p1506_p11, %p1306_p8  ;;  %p1512_p2 = por %p1511_p1, %p1510_p0 }
  0x66   : > { %p1508_p13 = pneg %p1507_p12 }
  0x68   : > { %p1513_p3 = pnand %p1512_p2, %p1508_p13 }
  0x6a   : > { %1516 = shalt.err (!%p1513_p3)  }
  0x6b   : > { %1289 = dma.hbm_to_vmem [thread:$0]  (%p1306_p8), %s157_s3, 16, %s159_s10, [#allocation3 + $0x5] }
  0x6c   : > { %s1185_s27 = sld [smem:[#allocation5 + $0x7]]  ;;  %s1531_s29 = sshra.s32 %s174_s30, 4  ;;  %s1532_s29 = int_to_ptr.hbm [resolvable:$true] %s1531_s29 }
  0x6d   : > { %s1533_s12 = scalar_lea.hbm %s1532_s29, 1  ;;  %p1538_p10 = scmp.lt.s32.totalorder %s1532_s29, %s2902_s1 }
  0x6e   : > { %p1534_p5 = scmp.ne.s32.totalorder %s1532_s29, %s1533_s12  ;;  %p1539_p11 = scmp.lt.s32.totalorder %s2390_s7, %s1533_s12 }
  0x70   : > { %p1535_p7 = pnand %p1534_p5, %p1306_p8  ;;  %p1540_p12 = por %p1539_p11, %p1538_p10 }
  0x72   : > { %p1536_p9 = pneg %p1535_p7 }
  0x74   : > { %p1541_p13 = pnand %p1540_p12, %p1536_p9 }
  0x76   : > { %1544 = shalt.err (!%p1541_p13)  }
  0x77   : > { %1290 = dma.hbm_to_vmem [thread:$0]  (%p1306_p8), %s174_s30, 16, %s176_s4, [#allocation3 + $0x6] }
  0x78   : > { %s1186_s10 = sld [smem:[#allocation5 + $0x8]]  ;;  %s2293_s18 = smov [#allocation2 + $0x7]  }
  0x79   : > { %s192_s5 = sshll.u32 %s2293_s18, 4  ;;  %s2294_s3 = smov [#allocation2 + $0x8]   ;;  %s193_s5 = int_to_ptr.vmem [resolvable:$true] %s192_s5 }
  0x7a   : > { %s2480_s25 = sshll.u32 %s2294_s3, 4  ;;  %s2483_s8 = sld [smem:[#allocation5 + $0x9]]  ;;  %s210_s25 = int_to_ptr.vmem [resolvable:$true] %s2480_s25 }
  0x7b   : > { %s180_s11 = scalar_lea.hbm %s2902_s1, %s1185_s27  ;;  %s2295_s9 = smov [#allocation2 + $0x9]  }
  0x7c   : > { %s190_s26 = sshll.u32 %s180_s11, 4  ;;  %s2488_s4 = sshll.u32 %s2295_s9, 4  ;;  %s191_s26 = int_to_ptr.hbm [resolvable:$true] %s190_s26  ;;  %s227_s4 = int_to_ptr.vmem [resolvable:$true] %s2488_s4 }
  0x7d   : > { %s1559_s0 = sshra.s32 %s191_s26, 4  ;;  %s1560_s0 = int_to_ptr.hbm [resolvable:$true] %s1559_s0 }
  0x7e   : > { %s197_s12 = scalar_lea.hbm %s2902_s1, %s1186_s10  ;;  %s1561_s17 = scalar_lea.hbm %s1560_s0, 1 }
  0x7f   : > { %p1562_p0 = scmp.ne.s32.totalorder %s1560_s0, %s1561_s17  ;;  %p1566_p3 = scmp.lt.s32.totalorder %s1560_s0, %s2902_s1 }
  0x80   : > { %p1567_p5 = scmp.lt.s32.totalorder %s2390_s7, %s1561_s17 }
  0x81   : > { %p1563_p1 = pnand %p1562_p0, %p1306_p8 }
  0x82   : > { %p1568_p7 = por %p1567_p5, %p1566_p3 }
  0x83   : > { %p1564_p2 = pneg %p1563_p1 }
  0x85   : > { %p1569_p9 = pnand %p1568_p7, %p1564_p2 }
  0x87   : > { %1572 = shalt.err (!%p1569_p9)  }
  0x88   : > { %1291 = dma.hbm_to_vmem [thread:$0]  (%p1306_p8), %s191_s26, 16, %s193_s5, [#allocation3 + $0x7] }
  0x89   : > { %s207_s27 = sshll.u32 %s197_s12, 4  ;;  %s214_s6 = scalar_lea.hbm %s2902_s1, %s2483_s8  ;;  %s208_s27 = int_to_ptr.hbm [resolvable:$true] %s207_s27 }
  0x8a   : > { %s1587_s11 = sshra.s32 %s208_s27, 4  ;;  %s1588_s11 = int_to_ptr.hbm [resolvable:$true] %s1587_s11 }
  0x8b   : > { %s1589_s9 = scalar_lea.hbm %s1588_s11, 1  ;;  %p1594_p13 = scmp.lt.s32.totalorder %s1588_s11, %s2902_s1 }
  0x8c   : > { %p1590_p10 = scmp.ne.s32.totalorder %s1588_s11, %s1589_s9  ;;  %p1595_p0 = scmp.lt.s32.totalorder %s2390_s7, %s1589_s9 }
  0x8e   : > { %p1591_p11 = pnand %p1590_p10, %p1306_p8  ;;  %p1596_p1 = por %p1595_p0, %p1594_p13 }
  0x90   : > { %p1592_p12 = pneg %p1591_p11 }
  0x92   : > { %p1597_p2 = pnand %p1596_p1, %p1592_p12 }
  0x94   : > { %1600 = shalt.err (!%p1597_p2)  }
  0x95   : > { %1292 = dma.hbm_to_vmem [thread:$0]  (%p1306_p8), %s208_s27, 16, %s210_s25, [#allocation3 + $0x8] }
  0x96   : > { %s224_s5 = sshll.u32 %s214_s6, 4  ;;  %s1188_s8 = sld [smem:[#allocation5 + $0xa]]  ;;  %s225_s5 = int_to_ptr.hbm [resolvable:$true] %s224_s5 }
  0x97   : > { %s1615_s26 = sshra.s32 %s225_s5, 4  ;;  %s1616_s26 = int_to_ptr.hbm [resolvable:$true] %s1615_s26 }
  0x98   : > { %s1617_s12 = scalar_lea.hbm %s1616_s26, 1  ;;  %p1622_p9 = scmp.lt.s32.totalorder %s1616_s26, %s2902_s1 }
  0x99   : > { %p1618_p3 = scmp.ne.s32.totalorder %s1616_s26, %s1617_s12  ;;  %p1623_p10 = scmp.lt.s32.totalorder %s2390_s7, %s1617_s12 }
  0x9b   : > { %p1619_p5 = pnand %p1618_p3, %p1306_p8  ;;  %p1624_p11 = por %p1623_p10, %p1622_p9 }
  0x9d   : > { %p1620_p7 = pneg %p1619_p5 }
  0x9f   : > { %p1625_p12 = pnand %p1624_p11, %p1620_p7 }
  0xa1   : > { %1628 = shalt.err (!%p1625_p12)  }
  0xa2   : > { %1293 = dma.hbm_to_vmem [thread:$0]  (%p1306_p8), %s225_s5, 16, %s227_s4, [#allocation3 + $0x9] }
  0xa3   : > { %s2296_s25 = smov [#allocation2 + $0xa]   ;;  %s1189_s3 = sld [smem:[#allocation5 + $0xb]] }
  0xa4   : > { %s243_s18 = sshll.u32 %s2296_s25, 4  ;;  %s2297_s27 = smov [#allocation2 + $0xb]   ;;  %s244_s18 = int_to_ptr.vmem [resolvable:$true] %s243_s18 }
  0xa5   : > { %s2526_s10 = sshll.u32 %s2297_s27, 4  ;;  %s1190_s28 = sld [smem:[#allocation5 + $0xc]]  ;;  %s261_s10 = int_to_ptr.vmem [resolvable:$true] %s2526_s10 }
  0xa6   : > { %s231_s9 = scalar_lea.hbm %s2902_s1, %s1188_s8  ;;  %s2298_s29 = smov [#allocation2 + $0xc]  }
  0xa7   : > { %s241_s30 = sshll.u32 %s231_s9, 4  ;;  %s2532_s4 = sshll.u32 %s2298_s29, 4  ;;  %s242_s30 = int_to_ptr.hbm [resolvable:$true] %s241_s30  ;;  %s278_s4 = int_to_ptr.vmem [resolvable:$true] %s2532_s4 }
  0xa8   : > { %s1643_s5 = sshra.s32 %s242_s30, 4  ;;  %s1644_s5 = int_to_ptr.hbm [resolvable:$true] %s1643_s5 }
  0xa9   : > { %s1645_s26 = scalar_lea.hbm %s1644_s5, 1  ;;  %p1650_p2 = scmp.lt.s32.totalorder %s1644_s5, %s2902_s1 }
  0xaa   : > { %p1646_p13 = scmp.ne.s32.totalorder %s1644_s5, %s1645_s26  ;;  %p1651_p3 = scmp.lt.s32.totalorder %s2390_s7, %s1645_s26 }
  0xac   : > { %p1647_p0 = pnand %p1646_p13, %p1306_p8  ;;  %p1652_p5 = por %p1651_p3, %p1650_p2 }
  0xae   : > { %p1648_p1 = pneg %p1647_p0 }
  0xb0   : > { %p1653_p7 = pnand %p1652_p5, %p1648_p1 }
  0xb2   : > { %1656 = shalt.err (!%p1653_p7)  }
  0xb3   : > { %1294 = dma.hbm_to_vmem [thread:$0]  (%p1306_p8), %s242_s30, 16, %s244_s18, [#allocation3 + $0xa] }
  0xb4   : > { %s248_s25 = scalar_lea.hbm %s2902_s1, %s1189_s3  ;;  %s265_s9 = scalar_lea.hbm %s2902_s1, %s1190_s28 }
  0xb5   : > { %s258_s27 = sshll.u32 %s248_s25, 4  ;;  %s275_s29 = sshll.u32 %s265_s9, 4  ;;  %s259_s27 = int_to_ptr.hbm [resolvable:$true] %s258_s27  ;;  %s276_s29 = int_to_ptr.hbm [resolvable:$true] %s275_s29 }
  0xb6   : > { %s1671_s5 = sshra.s32 %s259_s27, 4  ;;  %s1672_s5 = int_to_ptr.hbm [resolvable:$true] %s1671_s5 }
  0xb7   : > { %s1673_s26 = scalar_lea.hbm %s1672_s5, 1  ;;  %p1678_p12 = scmp.lt.s32.totalorder %s1672_s5, %s2902_s1 }
  0xb8   : > { %p1674_p9 = scmp.ne.s32.totalorder %s1672_s5, %s1673_s26  ;;  %p1679_p13 = scmp.lt.s32.totalorder %s2390_s7, %s1673_s26 }
  0xba   : > { %p1675_p10 = pnand %p1674_p9, %p1306_p8  ;;  %p1680_p0 = por %p1679_p13, %p1678_p12 }
  0xbc   : > { %p1676_p11 = pneg %p1675_p10 }
  0xbe   : > { %p1681_p1 = pnand %p1680_p0, %p1676_p11 }
  0xc0   : > { %1684 = shalt.err (!%p1681_p1)  }
  0xc1   : > { %1295 = dma.hbm_to_vmem [thread:$0]  (%p1306_p8), %s259_s27, 16, %s261_s10, [#allocation3 + $0xb] }
  0xc2   : > { %s1191_s3 = sld [smem:[#allocation5 + $0xd]]  ;;  %s1699_s28 = sshra.s32 %s276_s29, 4  ;;  %s1700_s28 = int_to_ptr.hbm [resolvable:$true] %s1699_s28 }
  0xc3   : > { %s1701_s12 = scalar_lea.hbm %s1700_s28, 1  ;;  %p1706_p7 = scmp.lt.s32.totalorder %s1700_s28, %s2902_s1 }
  0xc4   : > { %p1702_p2 = scmp.ne.s32.totalorder %s1700_s28, %s1701_s12  ;;  %p1707_p9 = scmp.lt.s32.totalorder %s2390_s7, %s1701_s12 }
  0xc6   : > { %p1703_p3 = pnand %p1702_p2, %p1306_p8  ;;  %p1708_p10 = por %p1707_p9, %p1706_p7 }
  0xc8   : > { %p1704_p5 = pneg %p1703_p3 }
  0xca   : > { %p1709_p11 = pnand %p1708_p10, %p1704_p5 }
  0xcc   : > { %1712 = shalt.err (!%p1709_p11)  }
  0xcd   : > { %1296 = dma.hbm_to_vmem [thread:$0]  (%p1306_p8), %s276_s29, 16, %s278_s4, [#allocation3 + $0xc] }
  0xce   : > { %s1192_s10 = sld [smem:[#allocation5 + $0xe]]  ;;  %s2299_s17 = smov [#allocation2 + $0xd]  }
  0xcf   : > { %s294_s25 = sshll.u32 %s2299_s17, 4  ;;  %s2300_s27 = smov [#allocation2 + $0xe]   ;;  %s295_s25 = int_to_ptr.vmem [resolvable:$true] %s294_s25 }
  0xd0   : > { %s2569_s6 = sshll.u32 %s2300_s27, 4  ;;  %s2572_s11 = sld [smem:[#allocation5 + $0xf]]  ;;  %s312_s6 = int_to_ptr.vmem [resolvable:$true] %s2569_s6 }
  0xd1   : > { %s282_s26 = scalar_lea.hbm %s2902_s1, %s1191_s3  ;;  %s2301_s30 = smov [#allocation2 + $0xf]  }
  0xd2   : > { %s292_s18 = sshll.u32 %s282_s26, 4  ;;  %s2577_s4 = sshll.u32 %s2301_s30, 4  ;;  %s293_s18 = int_to_ptr.hbm [resolvable:$true] %s292_s18  ;;  %s329_s4 = int_to_ptr.vmem [resolvable:$true] %s2577_s4 }
  0xd3   : > { %s1727_s0 = sshra.s32 %s293_s18, 4  ;;  %s1728_s0 = int_to_ptr.hbm [resolvable:$true] %s1727_s0 }
  0xd4   : > { %s299_s12 = scalar_lea.hbm %s2902_s1, %s1192_s10  ;;  %s1729_s8 = scalar_lea.hbm %s1728_s0, 1 }
  0xd5   : > { %p1730_p12 = scmp.ne.s32.totalorder %s1728_s0, %s1729_s8  ;;  %p1734_p1 = scmp.lt.s32.totalorder %s1728_s0, %s2902_s1 }
  0xd6   : > { %p1735_p2 = scmp.lt.s32.totalorder %s2390_s7, %s1729_s8 }
  0xd7   : > { %p1731_p13 = pnand %p1730_p12, %p1306_p8 }
  0xd8   : > { %p1736_p3 = por %p1735_p2, %p1734_p1 }
  0xd9   : > { %p1732_p0 = pneg %p1731_p13 }
  0xdb   : > { %p1737_p5 = pnand %p1736_p3, %p1732_p0 }
  0xdd   : > { %1740 = shalt.err (!%p1737_p5)  }
  0xde   : > { %1297 = dma.hbm_to_vmem [thread:$0]  (%p1306_p8), %s293_s18, 16, %s295_s25, [#allocation3 + $0xd] }
  0xdf   : > { %s309_s3 = sshll.u32 %s299_s12, 4  ;;  %s316_s5 = scalar_lea.hbm %s2902_s1, %s2572_s11  ;;  %s310_s3 = int_to_ptr.hbm [resolvable:$true] %s309_s3 }
  0xe0   : > { %s1755_s26 = sshra.s32 %s310_s3, 4  ;;  %s1756_s26 = int_to_ptr.hbm [resolvable:$true] %s1755_s26 }
  0xe1   : > { %s1757_s30 = scalar_lea.hbm %s1756_s26, 1  ;;  %p1762_p11 = scmp.lt.s32.totalorder %s1756_s26, %s2902_s1 }
  0xe2   : > { %p1758_p7 = scmp.ne.s32.totalorder %s1756_s26, %s1757_s30  ;;  %p1763_p12 = scmp.lt.s32.totalorder %s2390_s7, %s1757_s30 }
  0xe4   : > { %p1759_p9 = pnand %p1758_p7, %p1306_p8  ;;  %p1764_p13 = por %p1763_p12, %p1762_p11 }
  0xe6   : > { %p1760_p10 = pneg %p1759_p9 }
  0xe8   : > { %p1765_p0 = pnand %p1764_p13, %p1760_p10 }
  0xea   : > { %1768 = shalt.err (!%p1765_p0)  }
  0xeb   : > { %1298 = dma.hbm_to_vmem [thread:$0]  (%p1306_p8), %s310_s3, 16, %s312_s6, [#allocation3 + $0xe] }
  0xec   : > { %s326_s25 = sshll.u32 %s316_s5, 4  ;;  %s327_s25 = int_to_ptr.hbm [resolvable:$true] %s326_s25 }
  0xed   : > { %s1783_s11 = sshra.s32 %s327_s25, 4  ;;  %s1784_s11 = int_to_ptr.hbm [resolvable:$true] %s1783_s11 }
  0xee   : > { %s1785_s18 = scalar_lea.hbm %s1784_s11, 1  ;;  %p1790_p5 = scmp.lt.s32.totalorder %s1784_s11, %s2902_s1 }
  0xef   : > { %p1786_p1 = scmp.ne.s32.totalorder %s1784_s11, %s1785_s18  ;;  %p1791_p7 = scmp.lt.s32.totalorder %s2390_s7, %s1785_s18 }
  0xf1   : > { %p1787_p2 = pnand %p1786_p1, %p1306_p8  ;;  %p1792_p9 = por %p1791_p7, %p1790_p5 }
  0xf3   : > { %p1788_p3 = pneg %p1787_p2 }
  0xf5   : > { %p1793_p10 = pnand %p1792_p9, %p1788_p3 }
  0xf7   : > { %1796 = shalt.err (!%p1793_p10)  }
  0xf8   : > { %1299 = dma.hbm_to_vmem [thread:$0]  (%p1306_p8), %s327_s25, 16, %s329_s4, [#allocation3 + $0xf] }
  0xf9   : > { %s2614_s6 = scalar_lea.vmem [#allocation6], %s2363_s24  ;;  %p1194_p11 = scmp.ge.s32.totalorder %s2339_s16, 2 }
  0xfb   : > { %336 = sbr.rel (%p1194_p11) target bundleno = 476 (0x1dc), region = 84 }
 0x100   : > { %s337_s8 = ssub.s32 1, %s2905_s23  ;;  %s1280_s17 = sshll.u32 %s2283_s15, 4 }
 0x101   : > { %s2620_s27 = sadd.s32 16, %s1280_s17  ;;  %s1196_s3 = sshll.u32 %s337_s8, 4 }
 0x102   : > { %s339_s10 = sld [smem:[#allocation5 + %s2620_s27]]  ;;  %s2623_s9 = scalar_lea.vmem [#allocation2], %s1196_s3 }
 0x103   : > { %s353_s24 = sshll.u32 %s2623_s9, 4  ;;  %s357_s4 = sadd.s32 1, %s2620_s27  ;;  %s354_s24 = int_to_ptr.vmem [resolvable:$true] %s353_s24 }
 0x104   : > { %s358_s5 = sld [smem:[#allocation5 + %s357_s4]]  ;;  %s1004_s26 = scalar_lea.vmem %s2623_s9, 1 [#allocation2] }
 0x105   : > { %s2628_s30 = scalar_lea.sflag [#allocation3], %s1196_s3  ;;  %s2631_s28 = sshll.u32 %s1004_s26, 4 }
 0x106   : > { %s1007_s29 = scalar_lea.sflag %s2628_s30, 1 [#allocation3]  ;;  %2910 = sst [smem:[#allocation92_spill]] %s2631_s28 }
 0x107   : > { %s376_s25 = sadd.s32 2, %s2620_s27  ;;  %s1011_s17 = scalar_lea.vmem %s2623_s9, 2 [#allocation2] }
 0x108   : > { %s340_s12 = scalar_lea.hbm %s2902_s1, %s339_s10  ;;  %s2638_s0 = sld [smem:[#allocation5 + %s376_s25]] }
 0x109   : > { %s351_s8 = sshll.u32 %s340_s12, 4  ;;  %s352_s8 = int_to_ptr.hbm [resolvable:$true] %s351_s8 }
 0x10a   : > { %s1811_s4 = sshra.s32 %s352_s8, 4  ;;  %s1812_s4 = int_to_ptr.hbm [resolvable:$true] %s1811_s4 }
 0x10b   : > { %s1813_s22 = scalar_lea.hbm %s1812_s4, 1  ;;  %p1816_p12 = scmp.lt.s32.totalorder %s1812_s4, %s2902_s1 }
 0x10c   : > { %p1814_p8 = scmp.ne.s32.totalorder %s1812_s4, %s1813_s22  ;;  %p1817_p13 = scmp.lt.s32.totalorder %s2390_s7, %s1813_s22 }
 0x10e   : > { %p1818_p0 = por %p1817_p13, %p1816_p12 }
 0x110   : > { %p1819_p1 = pnand %p1818_p0, %p1814_p8 }
 0x112   : > { %1822 = shalt.err (!%p1819_p1)  }
 0x113   : > { %356 = dma.hbm_to_vmem [thread:$0]  %s352_s8, 16, %s354_s24, %s2628_s30 }
 0x114   : > { %s359_s11 = scalar_lea.hbm %s2902_s1, %s358_s5  ;;  %s2650_s18 = sshll.u32 %s1011_s17, 4  ;;  %s392_s18 = int_to_ptr.vmem [resolvable:$true] %s2650_s18 }
 0x115   : > { %s370_s12 = sshll.u32 %s359_s11, 4  ;;  %s378_s22 = scalar_lea.hbm %s2902_s1, %s2638_s0  ;;  %s371_s12 = int_to_ptr.hbm [resolvable:$true] %s370_s12 }
 0x116   : > { %s1835_s26 = sshra.s32 %s371_s12, 4  ;;  %s1836_s26 = int_to_ptr.hbm [resolvable:$true] %s1835_s26 }
 0x117   : > { %s1837_s3 = scalar_lea.hbm %s1836_s26, 1  ;;  %p1840_p3 = scmp.lt.s32.totalorder %s1836_s26, %s2902_s1 }
 0x118   : > { %p1838_p2 = scmp.ne.s32.totalorder %s1836_s26, %s1837_s3  ;;  %p1841_p5 = scmp.lt.s32.totalorder %s2390_s7, %s1837_s3 }
 0x11a   : > { %p1842_p7 = por %p1841_p5, %p1840_p3 }
 0x11c   : > { %p1843_p9 = pnand %p1842_p7, %p1838_p2 }
 0x11e   : > { %1846 = shalt.err (!%p1843_p9)  }
 0x11f   : > { %s2911_s5 = sld [smem:[#allocation92_spill]]  ;;  %s389_s0 = sshll.u32 %s378_s22, 4  ;;  %s390_s0 = int_to_ptr.hbm [resolvable:$true] %s389_s0 }
 0x120   : > { %s395_s17 = sadd.s32 3, %s2620_s27  ;;  %s1859_s25 = sshra.s32 %s390_s0, 4  ;;  %s1860_s25 = int_to_ptr.hbm [resolvable:$true] %s1859_s25 }
 0x121   : > { %s396_s10 = sld [smem:[#allocation5 + %s395_s17]]  ;;  %s1861_s11 = scalar_lea.hbm %s1860_s25, 1 }
 0x122   : > { %p1862_p10 = scmp.ne.s32.totalorder %s1860_s25, %s1861_s11  ;;  %p1864_p11 = scmp.lt.s32.totalorder %s1860_s25, %s2902_s1 }
 0x123   : > { %p1865_p8 = scmp.lt.s32.totalorder %s2390_s7, %s1861_s11 }
 0x125   : > { %s2912_s8 = int_to_ptr.vmem [resolvable:$true] %s2911_s5  ;;  %p1866_p12 = por %p1865_p8, %p1864_p11 }
 0x126   : > { %375 = dma.hbm_to_vmem [thread:$0]  %s371_s12, 16, %s2912_s8, %s1007_s29 }
 0x127   : > { %p1867_p13 = pnand %p1866_p12, %p1862_p10 }
 0x129   : > { %1870 = shalt.err (!%p1867_p13)  }
 0x12a   : > { %s2913_s23 = scalar_lea.sflag %s2628_s30, 2 [#allocation3]  ;;  %s1018_s29 = scalar_lea.vmem %s2623_s9, 3 [#allocation2] }
 0x12b   : > { %394 = dma.hbm_to_vmem [thread:$0]  %s390_s0, 16, %s392_s18, %s2913_s23 }
 0x12c   : > { %s1021_s12 = scalar_lea.sflag %s2628_s30, 3 [#allocation3]  ;;  %s410_s4 = sshll.u32 %s1018_s29, 4  ;;  %s411_s4 = int_to_ptr.vmem [resolvable:$true] %s410_s4 }
 0x12d   : > { %s414_s22 = sadd.s32 4, %s2620_s27  ;;  %s1025_s24 = scalar_lea.vmem %s2623_s9, 4 [#allocation2] }
 0x12e   : > { %s415_s26 = sld [smem:[#allocation5 + %s414_s22]]  ;;  %s397_s25 = scalar_lea.hbm %s2902_s1, %s396_s10 }
 0x12f   : > { %s2680_s11 = sshll.u32 %s1025_s24, 4  ;;  %s408_s28 = sshll.u32 %s397_s25, 4  ;;  %s409_s28 = int_to_ptr.hbm [resolvable:$true] %s408_s28 }
 0x130   : > { %2914 = sst [smem:[#allocation92_spill]] %s2680_s11  ;;  %s433_s18 = sadd.s32 5, %s2620_s27 }
 0x131   : > { %s1883_s0 = sshra.s32 %s409_s28, 4  ;;  %s1884_s0 = int_to_ptr.hbm [resolvable:$true] %s1883_s0 }
 0x132   : > { %s1885_s3 = scalar_lea.hbm %s1884_s0, 1  ;;  %p1888_p1 = scmp.lt.s32.totalorder %s1884_s0, %s2902_s1 }
 0x133   : > { %p1886_p0 = scmp.ne.s32.totalorder %s1884_s0, %s1885_s3  ;;  %p1889_p2 = scmp.lt.s32.totalorder %s2390_s7, %s1885_s3 }
 0x135   : > { %p1890_p3 = por %p1889_p2, %p1888_p1 }
 0x137   : > { %p1891_p5 = pnand %p1890_p3, %p1886_p0 }
 0x139   : > { %1894 = shalt.err (!%p1891_p5)  }
 0x13a   : > { %413 = dma.hbm_to_vmem [thread:$0]  %s409_s28, 16, %s411_s4, %s1021_s12 }
 0x13b   : > { %s416_s24 = scalar_lea.hbm %s2902_s1, %s415_s26  ;;  %s434_s8 = sld [smem:[#allocation5 + %s433_s18]] }
 0x13c   : > { %s427_s17 = sshll.u32 %s416_s24, 4  ;;  %s1032_s25 = scalar_lea.vmem %s2623_s9, 5 [#allocation2]  ;;  %s428_s17 = int_to_ptr.hbm [resolvable:$true] %s427_s17 }
 0x13d   : > { %s1907_s5 = sshra.s32 %s428_s17, 4  ;;  %s1908_s5 = int_to_ptr.hbm [resolvable:$true] %s1907_s5 }
 0x13e   : > { %s1909_s0 = scalar_lea.hbm %s1908_s5, 1  ;;  %p1912_p9 = scmp.lt.s32.totalorder %s1908_s5, %s2902_s1 }
 0x13f   : > { %p1910_p7 = scmp.ne.s32.totalorder %s1908_s5, %s1909_s0  ;;  %p1913_p10 = scmp.lt.s32.totalorder %s2390_s7, %s1909_s0 }
 0x141   : > { %p1914_p11 = por %p1913_p10, %p1912_p9 }
 0x143   : > { %p1915_p8 = pnand %p1914_p11, %p1910_p7 }
 0x145   : > { %1918 = shalt.err (!%p1915_p8)  }
 0x146   : > { %s2915_s12 = scalar_lea.sflag %s2628_s30, 4 [#allocation3]  ;;  %s2916_s4 = smov %s2680_s11 }
 0x147   : > { %s2917_s26 = int_to_ptr.vmem [resolvable:$true] %s2916_s4  ;;  %s448_s28 = sshll.u32 %s1032_s25, 4  ;;  %s449_s28 = int_to_ptr.vmem [resolvable:$true] %s448_s28 }
 0x148   : > { %432 = dma.hbm_to_vmem [thread:$0]  %s428_s17, 16, %s2917_s26, %s2915_s12 }
 0x149   : > { %s452_s18 = sadd.s32 6, %s2620_s27  ;;  %s435_s5 = scalar_lea.hbm %s2902_s1, %s434_s8 }
 0x14a   : > { %s453_s29 = sld [smem:[#allocation5 + %s452_s18]]  ;;  %s1039_s24 = scalar_lea.vmem %s2623_s9, 6 [#allocation2] }
 0x14b   : > { %s446_s0 = sshll.u32 %s435_s5, 4  ;;  %s2707_s23 = sshll.u32 %s1039_s24, 4  ;;  %s447_s0 = int_to_ptr.hbm [resolvable:$true] %s446_s0  ;;  %s468_s23 = int_to_ptr.vmem [resolvable:$true] %s2707_s23 }
 0x14c   : > { %s1931_s4 = sshra.s32 %s447_s0, 4  ;;  %s1932_s4 = int_to_ptr.hbm [resolvable:$true] %s1931_s4 }
 0x14d   : > { %s1933_s11 = scalar_lea.hbm %s1932_s4, 1  ;;  %p1936_p13 = scmp.lt.s32.totalorder %s1932_s4, %s2902_s1 }
 0x14e   : > { %p1934_p12 = scmp.ne.s32.totalorder %s1932_s4, %s1933_s11  ;;  %p1937_p0 = scmp.lt.s32.totalorder %s2390_s7, %s1933_s11 }
 0x150   : > { %p1938_p1 = por %p1937_p0, %p1936_p13 }
 0x152   : > { %p1939_p2 = pnand %p1938_p1, %p1934_p12 }
 0x154   : > { %1942 = shalt.err (!%p1939_p2)  }
 0x155   : > { %s2918_s8 = scalar_lea.sflag %s2628_s30, 5 [#allocation3]  ;;  %s471_s25 = sadd.s32 7, %s2620_s27 }
 0x156   : > { %451 = dma.hbm_to_vmem [thread:$0]  %s447_s0, 16, %s449_s28, %s2918_s8 }
 0x157   : > { %s454_s10 = scalar_lea.hbm %s2902_s1, %s453_s29  ;;  %s472_s22 = sld [smem:[#allocation5 + %s471_s25]] }
 0x158   : > { %s465_s5 = sshll.u32 %s454_s10, 4  ;;  %s1046_s11 = scalar_lea.vmem %s2623_s9, 7 [#allocation2]  ;;  %s466_s5 = int_to_ptr.hbm [resolvable:$true] %s465_s5 }
 0x159   : > { %s1955_s4 = sshra.s32 %s466_s5, 4  ;;  %s1956_s4 = int_to_ptr.hbm [resolvable:$true] %s1955_s4 }
 0x15a   : > { %s1957_s17 = scalar_lea.hbm %s1956_s4, 1  ;;  %p1960_p5 = scmp.lt.s32.totalorder %s1956_s4, %s2902_s1 }
 0x15b   : > { %p1958_p3 = scmp.ne.s32.totalorder %s1956_s4, %s1957_s17  ;;  %p1961_p7 = scmp.lt.s32.totalorder %s2390_s7, %s1957_s17 }
 0x15d   : > { %p1962_p9 = por %p1961_p7, %p1960_p5 }
 0x15f   : > { %p1963_p10 = pnand %p1962_p9, %p1958_p3 }
 0x161   : > { %1966 = shalt.err (!%p1963_p10)  }
 0x162   : > { %s2919_s28 = scalar_lea.sflag %s2628_s30, 6 [#allocation3]  ;;  %s486_s29 = sshll.u32 %s1046_s11, 4  ;;  %s487_s29 = int_to_ptr.vmem [resolvable:$true] %s486_s29 }
 0x163   : > { %470 = dma.hbm_to_vmem [thread:$0]  %s466_s5, 16, %s468_s23, %s2919_s28 }
 0x164   : > { %s490_s0 = sadd.s32 8, %s2620_s27  ;;  %s473_s3 = scalar_lea.hbm %s2902_s1, %s472_s22 }
 0x165   : > { %s491_s8 = sld [smem:[#allocation5 + %s490_s0]]  ;;  %s1053_s18 = scalar_lea.vmem %s2623_s9, 8 [#allocation2] }
 0x166   : > { %s484_s10 = sshll.u32 %s473_s3, 4  ;;  %s2734_s17 = sshll.u32 %s1053_s18, 4  ;;  %s485_s10 = int_to_ptr.hbm [resolvable:$true] %s484_s10  ;;  %s506_s17 = int_to_ptr.vmem [resolvable:$true] %s2734_s17 }
 0x167   : > { %s1979_s12 = sshra.s32 %s485_s10, 4  ;;  %s1980_s12 = int_to_ptr.hbm [resolvable:$true] %s1979_s12 }
 0x168   : > { %s1981_s24 = scalar_lea.hbm %s1980_s12, 1  ;;  %p1984_p8 = scmp.lt.s32.totalorder %s1980_s12, %s2902_s1 }
 0x169   : > { %p1982_p11 = scmp.ne.s32.totalorder %s1980_s12, %s1981_s24  ;;  %p1985_p12 = scmp.lt.s32.totalorder %s2390_s7, %s1981_s24 }
 0x16b   : > { %p1986_p13 = por %p1985_p12, %p1984_p8 }
 0x16d   : > { %p1987_p0 = pnand %p1986_p13, %p1982_p11 }
 0x16f   : > { %1990 = shalt.err (!%p1987_p0)  }
 0x170   : > { %s2920_s22 = scalar_lea.sflag %s2628_s30, 7 [#allocation3]  ;;  %s509_s11 = sadd.s32 9, %s2620_s27 }
 0x171   : > { %489 = dma.hbm_to_vmem [thread:$0]  %s485_s10, 16, %s487_s29, %s2920_s22 }
 0x172   : > { %s492_s25 = scalar_lea.hbm %s2902_s1, %s491_s8  ;;  %s510_s26 = sld [smem:[#allocation5 + %s509_s11]] }
 0x173   : > { %s503_s3 = sshll.u32 %s492_s25, 4  ;;  %s1060_s24 = scalar_lea.vmem %s2623_s9, 9 [#allocation2]  ;;  %s504_s3 = int_to_ptr.hbm [resolvable:$true] %s503_s3 }
 0x174   : > { %s2003_s12 = sshra.s32 %s504_s3, 4  ;;  %s2004_s12 = int_to_ptr.hbm [resolvable:$true] %s2003_s12 }
 0x175   : > { %s2005_s23 = scalar_lea.hbm %s2004_s12, 1  ;;  %p2008_p2 = scmp.lt.s32.totalorder %s2004_s12, %s2902_s1 }
 0x176   : > { %p2006_p1 = scmp.ne.s32.totalorder %s2004_s12, %s2005_s23  ;;  %p2009_p3 = scmp.lt.s32.totalorder %s2390_s7, %s2005_s23 }
 0x178   : > { %p2010_p5 = por %p2009_p3, %p2008_p2 }
 0x17a   : > { %p2011_p7 = pnand %p2010_p5, %p2006_p1 }
 0x17c   : > { %2014 = shalt.err (!%p2011_p7)  }
 0x17d   : > { %s2921_s29 = scalar_lea.sflag %s2628_s30, 8 [#allocation3]  ;;  %s524_s8 = sshll.u32 %s1060_s24, 4  ;;  %s525_s8 = int_to_ptr.vmem [resolvable:$true] %s524_s8 }
 0x17e   : > { %508 = dma.hbm_to_vmem [thread:$0]  %s504_s3, 16, %s506_s17, %s2921_s29 }
 0x17f   : > { %s528_s10 = sadd.s32 10, %s2620_s27  ;;  %s511_s4 = scalar_lea.hbm %s2902_s1, %s510_s26 }
 0x180   : > { %s529_s22 = sld [smem:[#allocation5 + %s528_s10]]  ;;  %s1067_s0 = scalar_lea.vmem %s2623_s9, 10 [#allocation2] }
 0x181   : > { %s522_s25 = sshll.u32 %s511_s4, 4  ;;  %s2761_s23 = sshll.u32 %s1067_s0, 4  ;;  %s523_s25 = int_to_ptr.hbm [resolvable:$true] %s522_s25  ;;  %s544_s23 = int_to_ptr.vmem [resolvable:$true] %s2761_s23 }
 0x182   : > { %s2027_s5 = sshra.s32 %s523_s25, 4  ;;  %s2028_s5 = int_to_ptr.hbm [resolvable:$true] %s2027_s5 }
 0x183   : > { %s2029_s18 = scalar_lea.hbm %s2028_s5, 1  ;;  %p2032_p10 = scmp.lt.s32.totalorder %s2028_s5, %s2902_s1 }
 0x184   : > { %p2030_p9 = scmp.ne.s32.totalorder %s2028_s5, %s2029_s18  ;;  %p2033_p11 = scmp.lt.s32.totalorder %s2390_s7, %s2029_s18 }
 0x186   : > { %p2034_p8 = por %p2033_p11, %p2032_p10 }
 0x188   : > { %p2035_p12 = pnand %p2034_p8, %p2030_p9 }
 0x18a   : > { %2038 = shalt.err (!%p2035_p12)  }
 0x18b   : > { %s2922_s26 = scalar_lea.sflag %s2628_s30, 9 [#allocation3]  ;;  %s547_s24 = sadd.s32 11, %s2620_s27 }
 0x18c   : > { %527 = dma.hbm_to_vmem [thread:$0]  %s523_s25, 16, %s525_s8, %s2922_s26 }
 0x18d   : > { %s530_s11 = scalar_lea.hbm %s2902_s1, %s529_s22  ;;  %s548_s28 = sld [smem:[#allocation5 + %s547_s24]] }
 0x18e   : > { %s541_s4 = sshll.u32 %s530_s11, 4  ;;  %s1074_s18 = scalar_lea.vmem %s2623_s9, 11 [#allocation2]  ;;  %s542_s4 = int_to_ptr.hbm [resolvable:$true] %s541_s4 }
 0x18f   : > { %s2051_s5 = sshra.s32 %s542_s4, 4  ;;  %s2052_s5 = int_to_ptr.hbm [resolvable:$true] %s2051_s5 }
 0x190   : > { %s2053_s17 = scalar_lea.hbm %s2052_s5, 1  ;;  %p2056_p0 = scmp.lt.s32.totalorder %s2052_s5, %s2902_s1 }
 0x191   : > { %p2054_p13 = scmp.ne.s32.totalorder %s2052_s5, %s2053_s17  ;;  %p2057_p1 = scmp.lt.s32.totalorder %s2390_s7, %s2053_s17 }
 0x193   : > { %p2058_p2 = por %p2057_p1, %p2056_p0 }
 0x195   : > { %p2059_p3 = pnand %p2058_p2, %p2054_p13 }
 0x197   : > { %2062 = shalt.err (!%p2059_p3)  }
 0x198   : > { %s2923_s8 = scalar_lea.sflag %s2628_s30, 10 [#allocation3]  ;;  %s562_s22 = sshll.u32 %s1074_s18, 4  ;;  %s563_s22 = int_to_ptr.vmem [resolvable:$true] %s562_s22 }
 0x199   : > { %546 = dma.hbm_to_vmem [thread:$0]  %s542_s4, 16, %s544_s23, %s2923_s8 }
 0x19a   : > { %s566_s25 = sadd.s32 12, %s2620_s27  ;;  %s549_s12 = scalar_lea.hbm %s2902_s1, %s548_s28 }
 0x19b   : > { %s567_s26 = sld [smem:[#allocation5 + %s566_s25]]  ;;  %s1081_s10 = scalar_lea.vmem %s2623_s9, 12 [#allocation2] }
 0x19c   : > { %s560_s11 = sshll.u32 %s549_s12, 4  ;;  %s2788_s17 = sshll.u32 %s1081_s10, 4  ;;  %s561_s11 = int_to_ptr.hbm [resolvable:$true] %s560_s11  ;;  %s582_s17 = int_to_ptr.vmem [resolvable:$true] %s2788_s17 }
 0x19d   : > { %s2075_s3 = sshra.s32 %s561_s11, 4  ;;  %s2076_s3 = int_to_ptr.hbm [resolvable:$true] %s2075_s3 }
 0x19e   : > { %s2077_s0 = scalar_lea.hbm %s2076_s3, 1  ;;  %p2080_p7 = scmp.lt.s32.totalorder %s2076_s3, %s2902_s1 }
 0x19f   : > { %p2078_p5 = scmp.ne.s32.totalorder %s2076_s3, %s2077_s0  ;;  %p2081_p9 = scmp.lt.s32.totalorder %s2390_s7, %s2077_s0 }
 0x1a1   : > { %p2082_p10 = por %p2081_p9, %p2080_p7 }
 0x1a3   : > { %p2083_p11 = pnand %p2082_p10, %p2078_p5 }
 0x1a5   : > { %2086 = shalt.err (!%p2083_p11)  }
 0x1a6   : > { %s2924_s28 = scalar_lea.sflag %s2628_s30, 11 [#allocation3]  ;;  %s585_s18 = sadd.s32 13, %s2620_s27 }
 0x1a7   : > { %565 = dma.hbm_to_vmem [thread:$0]  %s561_s11, 16, %s563_s22, %s2924_s28 }
 0x1a8   : > { %s568_s24 = scalar_lea.hbm %s2902_s1, %s567_s26  ;;  %s586_s29 = sld [smem:[#allocation5 + %s585_s18]] }
 0x1a9   : > { %s579_s12 = sshll.u32 %s568_s24, 4  ;;  %s1088_s0 = scalar_lea.vmem %s2623_s9, 13 [#allocation2]  ;;  %s580_s12 = int_to_ptr.hbm [resolvable:$true] %s579_s12 }
 0x1aa   : > { %s2099_s3 = sshra.s32 %s580_s12, 4  ;;  %s2100_s3 = int_to_ptr.hbm [resolvable:$true] %s2099_s3 }
 0x1ab   : > { %s2101_s23 = scalar_lea.hbm %s2100_s3, 1  ;;  %p2104_p12 = scmp.lt.s32.totalorder %s2100_s3, %s2902_s1 }
 0x1ac   : > { %p2102_p8 = scmp.ne.s32.totalorder %s2100_s3, %s2101_s23  ;;  %p2105_p13 = scmp.lt.s32.totalorder %s2390_s7, %s2101_s23 }
 0x1ae   : > { %p2106_p0 = por %p2105_p13, %p2104_p12 }
 0x1b0   : > { %p2107_p1 = pnand %p2106_p0, %p2102_p8 }
 0x1b2   : > { %2110 = shalt.err (!%p2107_p1)  }
 0x1b3   : > { %s2925_s22 = scalar_lea.sflag %s2628_s30, 12 [#allocation3]  ;;  %s600_s26 = sshll.u32 %s1088_s0, 4  ;;  %s601_s26 = int_to_ptr.vmem [resolvable:$true] %s600_s26 }
 0x1b4   : > { %584 = dma.hbm_to_vmem [thread:$0]  %s580_s12, 16, %s582_s17, %s2925_s22 }
 0x1b5   : > { %s604_s11 = sadd.s32 14, %s2620_s27  ;;  %s587_s5 = scalar_lea.hbm %s2902_s1, %s586_s29 }
 0x1b6   : > { %s605_s28 = sld [smem:[#allocation5 + %s604_s11]]  ;;  %s1095_s25 = scalar_lea.vmem %s2623_s9, 14 [#allocation2] }
 0x1b7   : > { %s598_s24 = sshll.u32 %s587_s5, 4  ;;  %s1098_s3 = scalar_lea.sflag %s2628_s30, 14 [#allocation3]  ;;  %s599_s24 = int_to_ptr.hbm [resolvable:$true] %s598_s24 }
 0x1b8   : > { %s2815_s23 = sshll.u32 %s1095_s25, 4  ;;  %s2123_s4 = sshra.s32 %s599_s24, 4  ;;  %s2124_s4 = int_to_ptr.hbm [resolvable:$true] %s2123_s4  ;;  %s620_s23 = int_to_ptr.vmem [resolvable:$true] %s2815_s23 }
 0x1b9   : > { %s2125_s10 = scalar_lea.hbm %s2124_s4, 1  ;;  %p2128_p3 = scmp.lt.s32.totalorder %s2124_s4, %s2902_s1 }
 0x1ba   : > { %p2126_p2 = scmp.ne.s32.totalorder %s2124_s4, %s2125_s10  ;;  %p2129_p5 = scmp.lt.s32.totalorder %s2390_s7, %s2125_s10 }
 0x1bc   : > { %p2130_p7 = por %p2129_p5, %p2128_p3 }
 0x1be   : > { %p2131_p9 = pnand %p2130_p7, %p2126_p2 }
 0x1c0   : > { %2134 = shalt.err (!%p2131_p9)  }
 0x1c1   : > { %s2926_s29 = scalar_lea.sflag %s2628_s30, 13 [#allocation3]  ;;  %s623_s0 = sadd.s32 15, %s2620_s27 }
 0x1c2   : > { %603 = dma.hbm_to_vmem [thread:$0]  %s599_s24, 16, %s601_s26, %s2926_s29 }
 0x1c3   : > { %s606_s18 = scalar_lea.hbm %s2902_s1, %s605_s28  ;;  %s624_s8 = sld [smem:[#allocation5 + %s623_s0]] }
 0x1c4   : > { %s617_s5 = sshll.u32 %s606_s18, 4  ;;  %s1102_s25 = scalar_lea.vmem %s2623_s9, 15 [#allocation2]  ;;  %s618_s5 = int_to_ptr.hbm [resolvable:$true] %s617_s5 }
 0x1c5   : > { %s2147_s10 = sshra.s32 %s618_s5, 4  ;;  %s2148_s10 = int_to_ptr.hbm [resolvable:$true] %s2147_s10 }
 0x1c6   : > { %s2149_s4 = scalar_lea.hbm %s2148_s10, 1  ;;  %p2152_p11 = scmp.lt.s32.totalorder %s2148_s10, %s2902_s1 }
 0x1c7   : > { %p2150_p10 = scmp.ne.s32.totalorder %s2148_s10, %s2149_s4  ;;  %p2153_p8 = scmp.lt.s32.totalorder %s2390_s7, %s2149_s4 }
 0x1c9   : > { %p2154_p12 = por %p2153_p8, %p2152_p11 }
 0x1cb   : > { %p2155_p13 = pnand %p2154_p12, %p2150_p10 }
 0x1cd   : > { %2158 = shalt.err (!%p2155_p13)  }
 0x1ce   : > { %622 = dma.hbm_to_vmem [thread:$0]  %s618_s5, 16, %s620_s23, %s1098_s3 }
 0x1cf   : > { %s638_s27 = sshll.u32 %s1102_s25, 4  ;;  %s1105_s9 = scalar_lea.sflag %s2628_s30, 15 [#allocation3]  ;;  %s639_s27 = int_to_ptr.vmem [resolvable:$true] %s638_s27 }
 0x1d0   : > { %s625_s24 = scalar_lea.hbm %s2902_s1, %s624_s8 }
 0x1d1   : > { %s636_s29 = sshll.u32 %s625_s24, 4  ;;  %s637_s29 = int_to_ptr.hbm [resolvable:$true] %s636_s29 }
 0x1d2   : > { %s2171_s0 = sshra.s32 %s637_s29, 4  ;;  %s2172_s0 = int_to_ptr.hbm [resolvable:$true] %s2171_s0 }
 0x1d3   : > { %s2173_s22 = scalar_lea.hbm %s2172_s0, 1  ;;  %p2176_p1 = scmp.lt.s32.totalorder %s2172_s0, %s2902_s1 }
 0x1d4   : > { %p2174_p0 = scmp.ne.s32.totalorder %s2172_s0, %s2173_s22  ;;  %p2177_p2 = scmp.lt.s32.totalorder %s2390_s7, %s2173_s22 }
 0x1d6   : > { %p2178_p3 = por %p2177_p2, %p2176_p1 }
 0x1d8   : > { %p2179_p5 = pnand %p2178_p3, %p2174_p0 }
 0x1da   : > { %2182 = shalt.err (!%p2179_p5)  }
 0x1db   : > { %641 = dma.hbm_to_vmem [thread:$0]  %s637_s29, 16, %s639_s27, %s1105_s9 }
 0x1dc PF: > { %s2927_s30 = sand.u32 1, %s2283_s15 }
 0x1dd   : > { %s2845_s3 = sshll.u32 %s2927_s30, 4 }
 0x1de   : > { %s2848_s23 = scalar_lea.sflag [#allocation3], %s2845_s3 }
 0x1df   : > { %2237 = dma.done.wait %s2848_s23, 16 }
 0x1e0   : > { %2238 = vsyncadd %s2848_s23, 4294967280  ;;  %s1110_s8 = scalar_lea.sflag %s2848_s23, 1 [#allocation3] }
 0x1e1   : > { %2239 = dma.done.wait %s1110_s8, 16 }
 0x1e2   : > { %2240 = vsyncadd %s1110_s8, 4294967280  ;;  %s1113_s7 = scalar_lea.sflag %s2848_s23, 2 [#allocation3] }
 0x1e3   : > { %2241 = dma.done.wait %s1113_s7, 16 }
 0x1e4   : > { %2242 = vsyncadd %s1113_s7, 4294967280  ;;  %s1116_s5 = scalar_lea.sflag %s2848_s23, 3 [#allocation3] }
 0x1e5   : > { %2243 = dma.done.wait %s1116_s5, 16 }
 0x1e6   : > { %2244 = vsyncadd %s1116_s5, 4294967280  ;;  %s1119_s25 = scalar_lea.sflag %s2848_s23, 4 [#allocation3] }
 0x1e7   : > { %2245 = dma.done.wait %s1119_s25, 16 }
 0x1e8   : > { %2246 = vsyncadd %s1119_s25, 4294967280  ;;  %s1122_s10 = scalar_lea.sflag %s2848_s23, 5 [#allocation3] }
 0x1e9   : > { %2247 = dma.done.wait %s1122_s10, 16 }
 0x1ea   : > { %2248 = vsyncadd %s1122_s10, 4294967280  ;;  %s1125_s4 = scalar_lea.sflag %s2848_s23, 6 [#allocation3] }
 0x1eb   : > { %2249 = dma.done.wait %s1125_s4, 16 }
 0x1ec   : > { %2250 = vsyncadd %s1125_s4, 4294967280  ;;  %s1128_s17 = scalar_lea.sflag %s2848_s23, 7 [#allocation3] }
 0x1ed   : > { %2251 = dma.done.wait %s1128_s17, 16 }
 0x1ee   : > { %2252 = vsyncadd %s1128_s17, 4294967280  ;;  %s1131_s12 = scalar_lea.sflag %s2848_s23, 8 [#allocation3] }
 0x1ef   : > { %2253 = dma.done.wait %s1131_s12, 16 }
 0x1f0   : > { %2254 = vsyncadd %s1131_s12, 4294967280  ;;  %s1134_s27 = scalar_lea.sflag %s2848_s23, 9 [#allocation3] }
 0x1f1   : > { %2255 = dma.done.wait %s1134_s27, 16 }
 0x1f2   : > { %2256 = vsyncadd %s1134_s27, 4294967280  ;;  %s1137_s9 = scalar_lea.sflag %s2848_s23, 10 [#allocation3] }
 0x1f3   : > { %2257 = dma.done.wait %s1137_s9, 16 }
 0x1f4   : > { %2258 = vsyncadd %s1137_s9, 4294967280  ;;  %s1140_s26 = scalar_lea.sflag %s2848_s23, 11 [#allocation3] }
 0x1f5   : > { %2259 = dma.done.wait %s1140_s26, 16 }
 0x1f6   : > { %2260 = vsyncadd %s1140_s26, 4294967280  ;;  %s1143_s28 = scalar_lea.sflag %s2848_s23, 12 [#allocation3] }
 0x1f7   : > { %2261 = dma.done.wait %s1143_s28, 16 }
 0x1f8   : > { %2262 = vsyncadd %s1143_s28, 4294967280  ;;  %s1146_s24 = scalar_lea.sflag %s2848_s23, 13 [#allocation3] }
 0x1f9   : > { %2263 = dma.done.wait %s1146_s24, 16 }
 0x1fa   : > { %2264 = vsyncadd %s1146_s24, 4294967280  ;;  %s1149_s29 = scalar_lea.sflag %s2848_s23, 14 [#allocation3] }
 0x1fb   : > { %2265 = dma.done.wait %s1149_s29, 16 }
 0x1fc   : > { %2266 = vsyncadd %s1149_s29, 4294967280  ;;  %s1152_s0 = scalar_lea.sflag %s2848_s23, 15 [#allocation3] }
 0x1fd   : > { %2267 = dma.done.wait %s1152_s0, 16 }
 0x1fe   : > { %2268 = vsyncadd %s1152_s0, 4294967280  ;;  %s1282_s22 = sshll.u32 %s2283_s15, 4  ;;  %s727_s8 = sshll.u32 %s2614_s6, 4  ;;  %s728_s8 = int_to_ptr.vmem [resolvable:$true] %s727_s8 }
 0x1ff   : > { %s726_s30 = scalar_lea.hbm %s2903_s2, %s1282_s22  ;;  %s707_s5 = scalar_lea.vmem [#allocation2], %s2845_s3 }
 0x200   : > { %s729_s7 = sshll.u32 %s726_s30, 4  ;;  %v708_v0 = vld [vmem:[%s707_s5] sm:$0xff]  ;;  %v709_v1 = vld [vmem:[%s707_s5 + $0x8] sm:$0xff]  ;;  %s2928_s23 = sand.u32 1, %s2279_s14   ;;  %s730_s7 = int_to_ptr.hbm [resolvable:$true] %s729_s7 }
 0x201   : > { %v710_v2 = vmul.f32 11.313708, %v708_v0  ;;  %v711_v3 = vmul.f32 11.313708, %v709_v1  ;;  %s715_s25 = scalar_lea.sflag [#allocation7], %s2928_s23  ;;  %s2209_s10 = sshra.s32 %s730_s7, 4  ;;  %s2210_s10 = int_to_ptr.hbm [resolvable:$true] %s2209_s10 }
 0x202   : > { %s2211_s4 = scalar_lea.hbm %s2210_s10, 16  ;;  %s2215_s3 = scalar_lea.hbm %s2903_s2, 32 }
 0x203   : > { %712 = vst [vmem:[%s2614_s6] sm:$0xff] %v710_v2  ;;  %p2212_p7 = scmp.ne.s32.totalorder %s2210_s10, %s2211_s4  ;;  %p2216_p11 = scmp.lt.s32.totalorder %s2210_s10, %s2903_s2 }
 0x204   : > { %713 = vst [vmem:[%s2614_s6 + $0x8] sm:$0xff] %v711_v3  ;;  %p2217_p8 = scmp.lt.s32.totalorder %s2215_s3, %s2211_s4 }
 0x205   : > { %p2213_p9 = pnand %p2212_p7, %p2350_p4 }
 0x206   : > { %p2218_p12 = por %p2217_p8, %p2216_p11 }
 0x207   : > { %p2214_p10 = pneg %p2213_p9 }
 0x209   : > { %p2219_p13 = pnand %p2218_p12, %p2214_p10 }
 0x20b   : > { %2222 = shalt.err (!%p2219_p13)
}
 0x20c   : > { %s2302_s6 = smov 128   ;;  %s2303_s26 = smov 8  }
 0x20d   : > { %1300 = dma.vmem_to_hbm [thread:$0]  (%p2350_p4), %s728_s8, 256, %s730_s7, %s715_s25, %s2302_s6, %s2302_s6, %s2303_s26  }
 0x20e PF: > { %p1307_p0 = scmp.ge.s32.totalorder %s2283_s15, 1  ;;  %s744_s28 = sand.u32 1, %s2275_s13  }
 0x20f   : > { %s745_s24 = scalar_lea.sflag [#allocation7], %s744_s28 }
 0x210   : > { %p1303_p1 = pnand %p1307_p0, %p2354_p6 }
 0x212   : > { %p1304_p2 = pneg %p1303_p1 }
 0x214   : > { %2270 = dma.done.wait (%p1304_p2), %s745_s24, 256  }
 0x215   : > { %2272 = vsyncadd (%p1304_p2), %s745_s24, 4294967040  ;;  %p20_p3 = scmp.ge.s32.totalorder %s2339_s16, 3   ;;  %s2929_s13 = smov %s2279_s14 }
 0x216   : > { %s2930_s14 = smov %s2348_s19  ;;  %s2931_s15 = smov %s2339_s16 }
 0x217   :  { %22 = sbr.rel (!%p20_p3) target bundleno = 9 (0x9), region = 322 }
 0x21c   :  { %751 = vsyncpa [#allocation7], 1 }
 0x21d   :  { %753 = vsyncpa [#allocation7 + $0x1], 1 }
 0x21e   :  { %754 = vsyncmov [#allocation3] }
 0x221   :  { %s755_s15 = vpop.sfrf %754 }
 0x222   :  { %p1248_p4 = scmp.ne.s32.totalorder %s755_s15, 0 }
 0x224   :  { %759 = shalt.err (%p1248_p4)  }
 0x225   :  { %761 = vsyncmov [#allocation3 + $0x1] }
 0x228   :  { %s762_s20 = vpop.sfrf %761 }
 0x229   :  { %p1249_p6 = scmp.ne.s32.totalorder %s762_s20, 0 }
 0x22b   :  { %766 = shalt.err (%p1249_p6)  }
 0x22c   :  { %768 = vsyncmov [#allocation3 + $0x2] }
 0x22f   :  { %s769_s21 = vpop.sfrf %768 }
 0x230   :  { %p1250_p5 = scmp.ne.s32.totalorder %s769_s21, 0 }
 0x232   :  { %773 = shalt.err (%p1250_p5)  }
 0x233   :  { %775 = vsyncmov [#allocation3 + $0x3] }
 0x236   :  { %s776_s29 = vpop.sfrf %775 }
 0x237   :  { %p1251_p7 = scmp.ne.s32.totalorder %s776_s29, 0 }
 0x239   :  { %780 = shalt.err (%p1251_p7)  }
 0x23a   :  { %782 = vsyncmov [#allocation3 + $0x4] }
 0x23d   :  { %s783_s16 = vpop.sfrf %782 }
 0x23e   :  { %p1252_p9 = scmp.ne.s32.totalorder %s783_s16, 0 }
 0x240   :  { %787 = shalt.err (%p1252_p9)  }
 0x241   :  { %789 = vsyncmov [#allocation3 + $0x5] }
 0x244   :  { %s790_s1 = vpop.sfrf %789 }
 0x245   :  { %p1253_p10 = scmp.ne.s32.totalorder %s790_s1, 0 }
 0x247   :  { %794 = shalt.err (%p1253_p10)  }
 0x248   :  { %796 = vsyncmov [#allocation3 + $0x6] }
 0x24b   :  { %s797_s2 = vpop.sfrf %796 }
 0x24c   :  { %p1254_p11 = scmp.ne.s32.totalorder %s797_s2, 0 }
 0x24e   :  { %801 = shalt.err (%p1254_p11)  }
 0x24f   :  { %803 = vsyncmov [#allocation3 + $0x7] }
 0x252   :  { %s804_s13 = vpop.sfrf %803 }
 0x253   :  { %p1255_p8 = scmp.ne.s32.totalorder %s804_s13, 0 }
 0x255   :  { %808 = shalt.err (%p1255_p8)  }
 0x256   :  { %810 = vsyncmov [#allocation3 + $0x8] }
 0x259   :  { %s811_s14 = vpop.sfrf %810 }
 0x25a   :  { %p1256_p12 = scmp.ne.s32.totalorder %s811_s14, 0 }
 0x25c   :  { %815 = shalt.err (%p1256_p12)  }
 0x25d   :  { %817 = vsyncmov [#allocation3 + $0x9] }
 0x260   :  { %s818_s19 = vpop.sfrf %817 }
 0x261   :  { %p1257_p13 = scmp.ne.s32.totalorder %s818_s19, 0 }
 0x263   :  { %822 = shalt.err (%p1257_p13)  }
 0x264   :  { %824 = vsyncmov [#allocation3 + $0xa] }
 0x267   :  { %s825_s0 = vpop.sfrf %824 }
 0x268   :  { %p1258_p0 = scmp.ne.s32.totalorder %s825_s0, 0 }
 0x26a   :  { %829 = shalt.err (%p1258_p0)  }
 0x26b   :  { %831 = vsyncmov [#allocation3 + $0xb] }
 0x26e   :  { %s832_s22 = vpop.sfrf %831 }
 0x26f   :  { %p1259_p1 = scmp.ne.s32.totalorder %s832_s22, 0 }
 0x271   :  { %836 = shalt.err (%p1259_p1)  }
 0x272   :  { %838 = vsyncmov [#allocation3 + $0xc] }
 0x275   :  { %s839_s11 = vpop.sfrf %838 }
 0x276   :  { %p1260_p2 = scmp.ne.s32.totalorder %s839_s11, 0 }
 0x278   :  { %843 = shalt.err (%p1260_p2)  }
 0x279   :  { %845 = vsyncmov [#allocation3 + $0xd] }
 0x27c   :  { %s846_s18 = vpop.sfrf %845 }
 0x27d   :  { %p1261_p3 = scmp.ne.s32.totalorder %s846_s18, 0 }
 0x27f   :  { %850 = shalt.err (%p1261_p3)  }
 0x280   :  { %852 = vsyncmov [#allocation3 + $0xe] }
 0x283   :  { %s853_s30 = vpop.sfrf %852 }
 0x284   :  { %p1262_p4 = scmp.ne.s32.totalorder %s853_s30, 0 }
 0x286   :  { %857 = shalt.err (%p1262_p4)  }
 0x287   :  { %859 = vsyncmov [#allocation3 + $0xf] }
 0x28a   :  { %s860_s8 = vpop.sfrf %859 }
 0x28b   :  { %p1263_p6 = scmp.ne.s32.totalorder %s860_s8, 0 }
 0x28d   :  { %864 = shalt.err (%p1263_p6)  }
 0x28e   :  { %866 = vsyncmov [#allocation3 + $0x10] }
 0x291   :  { %s867_s7 = vpop.sfrf %866 }
 0x292   :  { %p1264_p5 = scmp.ne.s32.totalorder %s867_s7, 0 }
 0x294   :  { %871 = shalt.err (%p1264_p5)  }
 0x295   :  { %873 = vsyncmov [#allocation3 + $0x11] }
 0x298   :  { %s874_s5 = vpop.sfrf %873 }
 0x299   :  { %p1265_p7 = scmp.ne.s32.totalorder %s874_s5, 0 }
 0x29b   :  { %878 = shalt.err (%p1265_p7)  }
 0x29c   :  { %880 = vsyncmov [#allocation3 + $0x12] }
 0x29f   :  { %s881_s23 = vpop.sfrf %880 }
 0x2a0   :  { %p1266_p9 = scmp.ne.s32.totalorder %s881_s23, 0 }
 0x2a2   :  { %885 = shalt.err (%p1266_p9)  }
 0x2a3   :  { %887 = vsyncmov [#allocation3 + $0x13] }
 0x2a6   :  { %s888_s25 = vpop.sfrf %887 }
 0x2a7   :  { %p1267_p10 = scmp.ne.s32.totalorder %s888_s25, 0 }
 0x2a9   :  { %892 = shalt.err (%p1267_p10)  }
 0x2aa   :  { %894 = vsyncmov [#allocation3 + $0x14] }
 0x2ad   :  { %s895_s10 = vpop.sfrf %894 }
 0x2ae   :  { %p1268_p11 = scmp.ne.s32.totalorder %s895_s10, 0 }
 0x2b0   :  { %899 = shalt.err (%p1268_p11)  }
 0x2b1   :  { %901 = vsyncmov [#allocation3 + $0x15] }
 0x2b4   :  { %s902_s4 = vpop.sfrf %901 }
 0x2b5   :  { %p1269_p8 = scmp.ne.s32.totalorder %s902_s4, 0 }
 0x2b7   :  { %906 = shalt.err (%p1269_p8)  }
 0x2b8   :  { %908 = vsyncmov [#allocation3 + $0x16] }
 0x2bb   :  { %s909_s17 = vpop.sfrf %908 }
 0x2bc   :  { %p1270_p12 = scmp.ne.s32.totalorder %s909_s17, 0 }
 0x2be   :  { %913 = shalt.err (%p1270_p12)  }
 0x2bf   :  { %915 = vsyncmov [#allocation3 + $0x17] }
 0x2c2   :  { %s916_s12 = vpop.sfrf %915 }
 0x2c3   :  { %p1271_p13 = scmp.ne.s32.totalorder %s916_s12, 0 }
 0x2c5   :  { %920 = shalt.err (%p1271_p13)  }
 0x2c6   :  { %922 = vsyncmov [#allocation3 + $0x18] }
 0x2c9   :  { %s923_s3 = vpop.sfrf %922 }
 0x2ca   :  { %p1272_p0 = scmp.ne.s32.totalorder %s923_s3, 0 }
 0x2cc   :  { %927 = shalt.err (%p1272_p0)  }
 0x2cd   :  { %929 = vsyncmov [#allocation3 + $0x19] }
 0x2d0   :  { %s930_s27 = vpop.sfrf %929 }
 0x2d1   :  { %p1273_p1 = scmp.ne.s32.totalorder %s930_s27, 0 }
 0x2d3   :  { %934 = shalt.err (%p1273_p1)  }
 0x2d4   :  { %936 = vsyncmov [#allocation3 + $0x1a] }
 0x2d7   :  { %s937_s9 = vpop.sfrf %936 }
 0x2d8   :  { %p1274_p2 = scmp.ne.s32.totalorder %s937_s9, 0 }
 0x2da   :  { %941 = shalt.err (%p1274_p2)  }
 0x2db   :  { %943 = vsyncmov [#allocation3 + $0x1b] }
 0x2de   :  { %s944_s6 = vpop.sfrf %943 }
 0x2df   :  { %p1275_p3 = scmp.ne.s32.totalorder %s944_s6, 0 }
 0x2e1   :  { %948 = shalt.err (%p1275_p3)  }
 0x2e2   :  { %950 = vsyncmov [#allocation3 + $0x1c] }
 0x2e5   :  { %s951_s26 = vpop.sfrf %950 }
 0x2e6   :  { %p1276_p4 = scmp.ne.s32.totalorder %s951_s26, 0 }
 0x2e8   :  { %955 = shalt.err (%p1276_p4)  }
 0x2e9   :  { %957 = vsyncmov [#allocation3 + $0x1d] }
 0x2ec   :  { %s958_s28 = vpop.sfrf %957 }
 0x2ed   :  { %p1277_p6 = scmp.ne.s32.totalorder %s958_s28, 0 }
 0x2ef   :  { %962 = shalt.err (%p1277_p6)  }
 0x2f0   :  { %964 = vsyncmov [#allocation3 + $0x1e] }
 0x2f3   :  { %s965_s24 = vpop.sfrf %964 }
 0x2f4   :  { %p1278_p5 = scmp.ne.s32.totalorder %s965_s24, 0 }
 0x2f6   :  { %969 = shalt.err (%p1278_p5)  }
 0x2f7   :  { %971 = vsyncmov [#allocation3 + $0x1f] }
 0x2fa   :  { %s972_s15 = vpop.sfrf %971 }
 0x2fb   :  { %p1279_p7 = scmp.ne.s32.totalorder %s972_s15, 0 }
 0x2fd   :  { %976 = shalt.err (%p1279_p7)  }

</bundles_post_ra>
